<compile_context>
chip_gen: v6e
topology: v6e:2x2x1
jax: 0.10.0
libtpu: 0.0.40
codegen_flags: <defaults>
</compile_context>

<pallas_src>
import jax
import jax.numpy as jnp
from jax.experimental import pallas as pl
from jax.experimental.pallas import tpu as pltpu


def _round_up(x, m):
    return ((x + m - 1) // m) * m


# ----------------------------------------------------------------------------
# Fused kernel: QKV projection -> softmax attention -> W projection + residual
# ----------------------------------------------------------------------------

def _fused_nonlocal_kernel(x_full_ref, x_q_ref, wqkv_ref, bqkv_ref,
                           ww_ref, bw_ref, o_ref):
    """One (batch, query-tile) grid step of the non-local block.

    x_full_ref : (1, C, L)   input image, all spatial positions (keys/values)
    x_q_ref    : (1, C, tq)  query columns of the same image (also residual)
    wqkv_ref   : (3*Dp, C)   [theta; phi; g] weights, each padded to Dp rows
    bqkv_ref   : (3*Dp, 1)   matching biases (zero in the padded rows)
    ww_ref     : (C, Dp)     W weights, output-channels-major, K padded to Dp
    bw_ref     : (C, 1)      W bias
    o_ref      : (1, C, tq)  x + W(y) for the query columns (NCHW layout)
    """
    dp = ww_ref.shape[1]

    x_full = x_full_ref[0].astype(jnp.bfloat16)            # (C, L)
    x_q = x_q_ref[0]                                       # (C, tq) f32 residual
    x_q_bf = x_q.astype(jnp.bfloat16)

    wqkv = wqkv_ref[...]                                   # (3*Dp, C) bf16
    bqkv = bqkv_ref[...]                                   # (3*Dp, 1) f32

    # 1x1-conv projections as channels-first matmuls (MXU, f32 accumulate).
    # theta only for this query tile; phi and g for every spatial position.
    theta = jnp.dot(wqkv[:dp], x_q_bf,
                    preferred_element_type=jnp.float32) + bqkv[:dp]      # (Dp, tq)
    pg = jnp.dot(wqkv[dp:], x_full,
                 preferred_element_type=jnp.float32) + bqkv[dp:]         # (2Dp, L)
    phi = pg[:dp]                                                        # (Dp, L)
    g = pg[dp:]                                                          # (Dp, L)

    # Tokens-major theta via one aligned 2-D transpose (XLU, cheap), then the
    # attention logits s[i, j] = theta_i . phi_j (no scaling, as in the spec).
    theta_tok = jnp.transpose(theta, (1, 0))                             # (tq, Dp)
    s = jnp.dot(theta_tok.astype(jnp.bfloat16), phi.astype(jnp.bfloat16),
                preferred_element_type=jnp.float32)                      # (tq, L)

    # Softmax over the key axis; all keys are present, so no online rescaling.
    m = jnp.max(s, axis=-1, keepdims=True)
    p = jnp.exp(s - m)
    l = jnp.sum(p, axis=-1, keepdims=True)
    p = p * pl.reciprocal(l, approx=True)

    # y = softmax(s) @ g, kept channels-first: (Dp, tq).
    y = jax.lax.dot_general(
        g.astype(jnp.bfloat16), p.astype(jnp.bfloat16),
        (((1,), (1,)), ((), ())), preferred_element_type=jnp.float32)

    # Final 1x1 conv W plus residual, stored straight back in NCHW layout.
    out = jnp.dot(ww_ref[...], y.astype(jnp.bfloat16),
                  preferred_element_type=jnp.float32)                    # (C, tq)
    o_ref[0] = (out + bw_ref[...] + x_q).astype(o_ref.dtype)


# ----------------------------------------------------------------------------
# Wrapper
# ----------------------------------------------------------------------------

def _prepare_weights(params, C, inter, dp):
    """Pack the four 1x1-conv weights into padded, channels-major matrices."""
    def seg(name):
        w = jnp.pad(params[name]["w"].T, ((0, dp - inter), (0, 0)))   # (Dp, C)
        b = jnp.pad(params[name]["b"], (0, dp - inter))               # (Dp,)
        return w, b

    ws, bs = zip(*(seg(n) for n in ("theta", "phi", "g")))
    wqkv = jnp.concatenate(ws, axis=0).astype(jnp.bfloat16)           # (3Dp, C)
    bqkv = jnp.concatenate(bs, axis=0).reshape(3 * dp, 1).astype(jnp.float32)
    ww = jnp.pad(params["W"]["w"].T,
                 ((0, 0), (0, dp - inter))).astype(jnp.bfloat16)      # (C, Dp)
    bw = params["W"]["b"].reshape(C, 1).astype(jnp.float32)
    return wqkv, bqkv, ww, bw


def non_local_block(params, x, *, tq=None):
    """x: (B, C, H, W) NCHW like PyTorch.  Returns NCHW, x.dtype."""
    B, C, H, W = x.shape
    inter = C // 2
    L = H * W
    dp = _round_up(inter, 128)      # pad each projection to a full lane tile

    if tq is None:
        # >= 2 query tiles when possible so multi-TensorCore parts (v7x) get
        # at least two pipelined grid steps per core.
        tq = 128 if (L % 128 == 0 and L >= 256) else L
    assert L % tq == 0, (L, tq)
    nq = L // tq

    # TODO(synk): for large H*W the per-step VMEM working set ((C,L) + (2Dp,L))
    # and the per-query-tile phi/g recompute stop being cheap; switch to a
    # tiled flash-attention pipeline (online softmax over key tiles) there.

    x3 = x.reshape(B, C, L)
    wqkv, bqkv, ww, bw = _prepare_weights(params, C, inter, dp)

    out = pl.pallas_call(
        _fused_nonlocal_kernel,
        out_shape=jax.ShapeDtypeStruct((B, C, L), x.dtype),
        grid=(B, nq),
        in_specs=[
            pl.BlockSpec((1, C, L), lambda b, q: (b, 0, 0)),    # all keys
            pl.BlockSpec((1, C, tq), lambda b, q: (b, 0, q)),   # query tile
            pl.BlockSpec((3 * dp, C), lambda b, q: (0, 0)),     # fused qkv w
            pl.BlockSpec((3 * dp, 1), lambda b, q: (0, 0)),     # fused qkv b
            pl.BlockSpec((C, dp), lambda b, q: (0, 0)),         # W weight
            pl.BlockSpec((C, 1), lambda b, q: (0, 0)),          # W bias
        ],
        out_specs=pl.BlockSpec((1, C, tq), lambda b, q: (b, 0, q)),
        compiler_params=pltpu.CompilerParams(
            dimension_semantics=("parallel", "parallel")),
    )(x3, x3, wqkv, bqkv, ww, bw)
    return out.reshape(B, C, H, W)


# ----------------------------------------------------------------------------
# Plain-JAX reference for a correctness sanity check
# ----------------------------------------------------------------------------

def non_local_block_ref(params, x):
    B, C, H, W = x.shape
    xf = jnp.transpose(x, (0, 2, 3, 1)).reshape(B, H * W, C).astype(jnp.float32)
    theta = xf @ params["theta"]["w"] + params["theta"]["b"]
    phi = xf @ params["phi"]["w"] + params["phi"]["b"]
    g = xf @ params["g"]["w"] + params["g"]["b"]
    f = jnp.einsum("bic,bjc->bij", theta, phi)
    p = jax.nn.softmax(f, axis=-1)
    y = jnp.einsum("bij,bjc->bic", p, g)
    out = y @ params["W"]["w"] + params["W"]["b"] + xf
    return jnp.transpose(out.reshape(B, H, W, C), (0, 3, 1, 2))


# ----------------------------------------------------------------------------
# Deterministic synthetic parameter init (mirrors the torch module's shapes)
# ----------------------------------------------------------------------------

class KeyGen:
    def __init__(self, key):
        self._key = key

    def __call__(self):
        self._key, k = jax.random.split(self._key)
        return k


def init_params(kg, in_channels):
    inter = in_channels // 2

    def lin(din, dout):
        return {"w": 0.05 * jax.random.normal(kg(), (din, dout), jnp.float32),
                "b": 0.05 * jax.random.normal(kg(), (dout,), jnp.float32)}

    return {
        "g": lin(in_channels, inter),
        "theta": lin(in_channels, inter),
        "phi": lin(in_channels, inter),
        "W": lin(inter, in_channels),
    }


# ----------------------------------------------------------------------------

if __name__ == "__main__":
    B, C, H, W = 2, 64, 16, 16

    key = jax.random.PRNGKey(0)
    kp, kx = jax.random.split(key)

    params = init_params(KeyGen(kp), C)
    x = jax.random.normal(kx, (B, C, H, W), dtype=jnp.float32)

    forward = jax.jit(non_local_block)
    out = jax.block_until_ready(forward(params, x))

    ref = non_local_block_ref(params, x)
    max_err = float(jnp.max(jnp.abs(out - ref)))

    assert out.shape == (B, C, H, W), out.shape
    assert bool(jnp.all(jnp.isfinite(out)))
    assert max_err < 1e-1, max_err        # bf16 MXU operands -> loose tol
    print("KERNEL_OK")
</pallas_src>

<mosaic_0001>
module attributes {stable_mosaic.version = 11 : i64} {
  func.func @_fused_nonlocal_kernel(%arg0: i32, %arg1: i32, %arg2: memref<1x64x256xf32, #tpu.memory_space<vmem>>, %arg3: memref<1x64x128xf32, #tpu.memory_space<vmem>>, %arg4: memref<384x64xbf16, #tpu.memory_space<vmem>>, %arg5: memref<384x1xf32, #tpu.memory_space<vmem>>, %arg6: memref<64x128xbf16, #tpu.memory_space<vmem>>, %arg7: memref<64x1xf32, #tpu.memory_space<vmem>>, %arg8: memref<1x64x128xf32, #tpu.memory_space<vmem>>) attributes {dimension_semantics = [#tpu.dimension_semantics<parallel>, #tpu.dimension_semantics<parallel>], iteration_bounds = array<i64: 2, 2>, scalar_prefetch = 0 : i64, scratch_operands = 0 : i64, tpu.core_type = #tpu.core_type<tc>, window_params = [{transform_indices = @transform_0, window_bounds = array<i64: 1, 64, 256>}, {transform_indices = @transform_1, window_bounds = array<i64: 1, 64, 128>}, {pipeline_mode = #tpu.pipeline_mode<synchronous>, transform_indices = @transform_2, window_bounds = array<i64: 384, 64>}, {pipeline_mode = #tpu.pipeline_mode<synchronous>, transform_indices = @transform_3, window_bounds = array<i64: 384, 1>}, {pipeline_mode = #tpu.pipeline_mode<synchronous>, transform_indices = @transform_4, window_bounds = array<i64: 64, 128>}, {pipeline_mode = #tpu.pipeline_mode<synchronous>, transform_indices = @transform_5, window_bounds = array<i64: 64, 1>}, {transform_indices = @transform_6, window_bounds = array<i64: 1, 64, 128>}]} {
    %c0 = arith.constant 0 : index
    %c0_0 = arith.constant 0 : index
    %c0_1 = arith.constant 0 : index
    %0 = vector.load %arg2[%c0, %c0_0, %c0_1] : memref<1x64x256xf32, #tpu.memory_space<vmem>>, vector<1x64x256xf32>
    %1 = vector.shape_cast %0 : vector<1x64x256xf32> to vector<64x256xf32>
    %2 = arith.truncf %1 : vector<64x256xf32> to vector<64x256xbf16>
    %c0_2 = arith.constant 0 : index
    %c0_3 = arith.constant 0 : index
    %c0_4 = arith.constant 0 : index
    %3 = vector.load %arg3[%c0_2, %c0_3, %c0_4] : memref<1x64x128xf32, #tpu.memory_space<vmem>>, vector<1x64x128xf32>
    %4 = vector.shape_cast %3 : vector<1x64x128xf32> to vector<64x128xf32>
    %5 = arith.truncf %4 : vector<64x128xf32> to vector<64x128xbf16>
    %c0_5 = arith.constant 0 : index
    %c0_6 = arith.constant 0 : index
    %6 = vector.load %arg4[%c0_5, %c0_6] : memref<384x64xbf16, #tpu.memory_space<vmem>>, vector<384x64xbf16>
    %c0_7 = arith.constant 0 : index
    %c0_8 = arith.constant 0 : index
    %7 = vector.load %arg5[%c0_7, %c0_8] : memref<384x1xf32, #tpu.memory_space<vmem>>, vector<384x1xf32>
    %8 = vector.extract_strided_slice %6 {offsets = [0, 0], sizes = [128, 64], strides = [1, 1]} : vector<384x64xbf16> to vector<128x64xbf16>
    %cst = arith.constant dense<0.000000e+00> : vector<128x128xf32>
    %9 = tpu.matmul %8, %5, %cst {dimension_numbers = #tpu.dot_dimension_numbers<[1], [0], [0], [1], [0, 0, 1, 1], [], []>} : vector<128x64xbf16>, vector<64x128xbf16>, vector<128x128xf32> -> vector<128x128xf32>
    %10 = vector.extract_strided_slice %7 {offsets = [0, 0], sizes = [128, 1], strides = [1, 1]} : vector<384x1xf32> to vector<128x1xf32>
    %11 = vector.broadcast %10 : vector<128x1xf32> to vector<128x128xf32>
    %12 = arith.addf %9, %11 : vector<128x128xf32>
    %13 = vector.extract_strided_slice %6 {offsets = [128, 0], sizes = [256, 64], strides = [1, 1]} : vector<384x64xbf16> to vector<256x64xbf16>
    %cst_9 = arith.constant dense<0.000000e+00> : vector<256x256xf32>
    %14 = tpu.matmul %13, %2, %cst_9 {dimension_numbers = #tpu.dot_dimension_numbers<[1], [0], [0], [1], [0, 0, 1, 1], [], []>} : vector<256x64xbf16>, vector<64x256xbf16>, vector<256x256xf32> -> vector<256x256xf32>
    %15 = vector.extract_strided_slice %7 {offsets = [128, 0], sizes = [256, 1], strides = [1, 1]} : vector<384x1xf32> to vector<256x1xf32>
    %16 = vector.broadcast %15 : vector<256x1xf32> to vector<256x256xf32>
    %17 = arith.addf %14, %16 : vector<256x256xf32>
    %18 = vector.extract_strided_slice %17 {offsets = [0, 0], sizes = [128, 256], strides = [1, 1]} : vector<256x256xf32> to vector<128x256xf32>
    %19 = vector.extract_strided_slice %17 {offsets = [128, 0], sizes = [128, 256], strides = [1, 1]} : vector<256x256xf32> to vector<128x256xf32>
    %20 = tpu.transpose %12, [1, 0] : vector<128x128xf32> -> vector<128x128xf32>
    %21 = arith.truncf %20 : vector<128x128xf32> to vector<128x128xbf16>
    %22 = arith.truncf %18 : vector<128x256xf32> to vector<128x256xbf16>
    %cst_10 = arith.constant dense<0.000000e+00> : vector<128x256xf32>
    %23 = tpu.matmul %21, %22, %cst_10 {dimension_numbers = #tpu.dot_dimension_numbers<[1], [0], [0], [1], [0, 0, 1, 1], [], []>} : vector<128x128xbf16>, vector<128x256xbf16>, vector<128x256xf32> -> vector<128x256xf32>
    %cst_11 = arith.constant dense<0xFF800000> : vector<128xf32>
    %24 = vector.multi_reduction <maximumf>, %23, %cst_11 [1] : vector<128x256xf32> to vector<128xf32>
    %25 = vector.shape_cast %24 : vector<128xf32> to vector<128x1xf32>
    %26 = vector.broadcast %25 : vector<128x1xf32> to vector<128x256xf32>
    %27 = arith.subf %23, %26 : vector<128x256xf32>
    %28 = math.exp %27 : vector<128x256xf32>
    %cst_12 = arith.constant dense<0.000000e+00> : vector<128xf32>
    %29 = vector.multi_reduction <add>, %28, %cst_12 [1] : vector<128x256xf32> to vector<128xf32>
    %30 = vector.shape_cast %29 : vector<128xf32> to vector<128x1xf32>
    %31 = tpu.reciprocal %30 {approx = true} : vector<128x1xf32> -> vector<128x1xf32>
    %32 = vector.broadcast %31 : vector<128x1xf32> to vector<128x256xf32>
    %33 = arith.mulf %28, %32 : vector<128x256xf32>
    %34 = arith.truncf %19 : vector<128x256xf32> to vector<128x256xbf16>
    %35 = arith.truncf %33 : vector<128x256xf32> to vector<128x256xbf16>
    %cst_13 = arith.constant dense<0.000000e+00> : vector<128x128xf32>
    %36 = tpu.matmul %34, %35, %cst_13 {dimension_numbers = #tpu.dot_dimension_numbers<[1], [1], [0], [0], [0, 0, 1, 0], [], []>} : vector<128x256xbf16>, vector<128x256xbf16>, vector<128x128xf32> -> vector<128x128xf32>
    %c0_14 = arith.constant 0 : index
    %c0_15 = arith.constant 0 : index
    %37 = vector.load %arg6[%c0_14, %c0_15] : memref<64x128xbf16, #tpu.memory_space<vmem>>, vector<64x128xbf16>
    %38 = arith.truncf %36 : vector<128x128xf32> to vector<128x128xbf16>
    %cst_16 = arith.constant dense<0.000000e+00> : vector<64x128xf32>
    %39 = tpu.matmul %37, %38, %cst_16 {dimension_numbers = #tpu.dot_dimension_numbers<[1], [0], [0], [1], [0, 0, 1, 1], [], []>} : vector<64x128xbf16>, vector<128x128xbf16>, vector<64x128xf32> -> vector<64x128xf32>
    %c0_17 = arith.constant 0 : index
    %c0_18 = arith.constant 0 : index
    %40 = vector.load %arg7[%c0_17, %c0_18] : memref<64x1xf32, #tpu.memory_space<vmem>>, vector<64x1xf32>
    %41 = vector.broadcast %40 : vector<64x1xf32> to vector<64x128xf32>
    %42 = arith.addf %39, %41 : vector<64x128xf32>
    %43 = arith.addf %42, %4 : vector<64x128xf32>
    %c0_19 = arith.constant 0 : index
    %c0_20 = arith.constant 0 : index
    %c0_21 = arith.constant 0 : index
    %44 = vector.load %arg8[%c0_19, %c0_20, %c0_21] : memref<1x64x128xf32, #tpu.memory_space<vmem>>, vector<1x64x128xf32>
    %45 = vector.shape_cast %44 : vector<1x64x128xf32> to vector<64x128xf32>
    %46 = vector.shape_cast %43 : vector<64x128xf32> to vector<1x64x128xf32>
    tpu.vector_store %arg8[%c0_19, %c0_20, %c0_21], %46 {strides = array<i32>} : memref<1x64x128xf32, #tpu.memory_space<vmem>>, vector<1x64x128xf32>,
    return
  }
  func.func @transform_0(%arg0: i32, %arg1: i32) -> (i32, i32, i32) {
    %c0_i32 = arith.constant 0 : i32
    %c0_i32_0 = arith.constant 0 : i32
    %c0_i32_1 = arith.constant 0 : i32
    return %arg0, %c0_i32, %c0_i32_0 : i32, i32, i32
  }
  func.func @transform_1(%arg0: i32, %arg1: i32) -> (i32, i32, i32) {
    %c0_i32 = arith.constant 0 : i32
    %c0_i32_0 = arith.constant 0 : i32
    return %arg0, %c0_i32, %arg1 : i32, i32, i32
  }
  func.func @transform_2(%arg0: i32, %arg1: i32) -> (i32, i32) {
    %c0_i32 = arith.constant 0 : i32
    %c0_i32_0 = arith.constant 0 : i32
    %c0_i32_1 = arith.constant 0 : i32
    return %c0_i32, %c0_i32_0 : i32, i32
  }
  func.func @transform_3(%arg0: i32, %arg1: i32) -> (i32, i32) {
    %c0_i32 = arith.constant 0 : i32
    %c0_i32_0 = arith.constant 0 : i32
    %c0_i32_1 = arith.constant 0 : i32
    return %c0_i32, %c0_i32_0 : i32, i32
  }
  func.func @transform_4(%arg0: i32, %arg1: i32) -> (i32, i32) {
    %c0_i32 = arith.constant 0 : i32
    %c0_i32_0 = arith.constant 0 : i32
    %c0_i32_1 = arith.constant 0 : i32
    return %c0_i32, %c0_i32_0 : i32, i32
  }
  func.func @transform_5(%arg0: i32, %arg1: i32) -> (i32, i32) {
    %c0_i32 = arith.constant 0 : i32
    %c0_i32_0 = arith.constant 0 : i32
    %c0_i32_1 = arith.constant 0 : i32
    return %c0_i32, %c0_i32_0 : i32, i32
  }
  func.func @transform_6(%arg0: i32, %arg1: i32) -> (i32, i32, i32) {
    %c0_i32 = arith.constant 0 : i32
    %c0_i32_0 = arith.constant 0 : i32
    return %arg0, %c0_i32, %arg1 : i32, i32, i32
  }
}

</mosaic_0001>

<bundles_post_ra>
// kernel: non_local_block.1
= control target key start
LH: loop header
LB: loop body
LE: loop exit
PB: predicated region body
PF: predicated region fallthrough
CT: control target
= control target key end

     0   :  { %s2491_s21 = smov 0   ;;  %s2493_s22 = smov 0   ;;  %s3384_s0 = inlined_call_operand.vmem [shape: f32[2,64,256], index: 0, kind: input, shape index: {}, may-alias: {0,1}]   ;;  %s3385_s1 = inlined_call_operand.vmem [shape: f32[2,64,256], index: 1, kind: input, shape index: {}, may-alias: {0,1}]   ;;  %s3386_s2 = inlined_call_operand.vmem [shape: bf16[384,64], index: 2, kind: input, shape index: {}]   ;;  %s3387_s3 = inlined_call_operand.vmem [shape: f32[384,1], index: 3, kind: input, shape index: {}]   ;;  %s3388_s4 = inlined_call_operand.vmem [shape: bf16[64,128], index: 4, kind: input, shape index: {}]   ;;  %s3389_s5 = inlined_call_operand.vmem [shape: f32[64,1], index: 5, kind: input, shape index: {}]   ;;  %s3390_s6 = inlined_call_operand.vmem [shape: f32[2,64,256], index: 6, kind: output, shape index: {}]  }
   0x1   :  { %s2495_s23 = smov 0   ;;  %s2497_s24 = smov 0  }
   0x2   :  { %s2499_s25 = smov 0   ;;  %s2501_s26 = smov 0  }
   0x3   :  { %s2503_s27 = smov 0  }
   0x4 LB: > { %s25_s28 = sadd.s32 1, %s2445_s25  ;;  %s28_s29 = sadd.s32 1, %s2449_s26  ;;  %s2453_s27 = sphi %s2503_s27, %s16_s27   ;;  %s2449_s26 = sphi %s2501_s26, %s3397_s26   ;;  %s2445_s25 = sphi %s2499_s25, %s3396_s25   ;;  %s2441_s24 = sphi %s2497_s24, %s3395_s24   ;;  %s2437_s23 = sphi %s2495_s23, %s3394_s23   ;;  %s2433_s22 = sphi %s2493_s22, %s3393_s22   ;;  %s2429_s21 = sphi %s2491_s21, %s3392_s21  }
   0x5   : > { %p26_p0 = scmp.ge.s32.totalorder %s25_s28, 2  ;;  %s2066_s30 = sadd.s32 4294967295, %s2453_s27  }
   0x6   : > { %p70_p1 = scmp.ne.s32.totalorder %s2433_s22, %s2429_s21  ;;  %p71_p2 = scmp.eq.s32.totalorder %s2453_s27, 0 }
   0x7   : > { %s3399_s28 = smov (%p26_p0, %s25_s28), 0  ;;  %s3401_s29 = smov (!%p26_p0, %s28_s29), %s2449_s26 }
   0x8   : > { %p30_p3 = scmp.ge.s32.totalorder %s3401_s29, 2  ;;  %p186_p4 = scmp.eq.s32.totalorder %s2066_s30, 3 }
   0x9   : > { %s59_s7 = ssub.s32 %s2445_s25, %s3399_s28  ;;  %p72_p5 = por %p71_p2, %p70_p1 }
   0xa   : > { %s3403_s29 = smov (%p30_p3, %s3401_s29), 0  ;;  %p2539_p6 = por %p186_p4, %p70_p1 }
   0xb   : > { %s58_s9 = ssub.s32 %s2449_s26, %s3403_s29  ;;  %s63_s11 = sadd.s32 1, %s2433_s22 }
   0xc   : > { %s60_s10 = sor.u32 %s59_s7, %s58_s9  ;;  %p2069_p8 = scmp.ge.s32.totalorder %s2453_s27, 4 }
   0xd   : > { %p61_p7 = scmp.eq.s32.totalorder %s60_s10, 0 }
   0xe   : > { %220 = sbr.rel (%p2069_p8) target bundleno = 29 (0x1d), region = 32 }
   0xf   : > { %s2547_s12 = scalar_select %p61_p7, %s2433_s22, %s63_s11  }
  0x13   : > { %231 = sbr.rel (!%p72_p5) target bundleno = 29 (0x1d), region = 40  ;;  %s233_s13 = sand.u32 (%p72_p5), 1, %s2433_s22  }
  0x14   : > { %s2071_s14 = sshll.u32 (%p72_p5), %s2449_s26, 4  ;;  %s2070_s15 = sshll.u32 (%p72_p5), %s233_s13, 6 }
  0x15   : > { %s237_s16 = sadd.s32 (%p72_p5), %s2445_s25, %s2071_s14  ;;  %s235_s30 = scalar_lea.vmem (%p72_p5), [#allocation2], %s2070_s15 }
  0x16   : > { %s2072_s17 = sshll.u32 (%p72_p5), %s237_s16, 3 }
  0x17   : > { %s239_s20 = scalar_lea.vmem (%p72_p5), %s3385_s1, %s2072_s17 }
  0x18   : > { %v282_v0 = vld [vmem:[%s239_s20] sm:$0xff]  ;;  %v284_v1 = vld [vmem:[%s239_s20 + $0x10] sm:$0xff] }
  0x19   : > { %v286_v2 = vld [vmem:[%s239_s20 + $0x20] sm:$0xff]  ;;  %283 = vst [vmem:[%s235_s30] sm:$0xff] %v282_v0  ;;  %285 = vst [vmem:[%s235_s30 + $0x8] sm:$0xff] %v284_v1  ;;  %v288_v3 = vld [vmem:[%s239_s20 + $0x30] sm:$0xff] }
  0x1a   : > { %287 = vst [vmem:[%s235_s30 + $0x10] sm:$0xff] %v286_v2  ;;  %v290_v4 = vld [vmem:[%s239_s20 + $0x40] sm:$0xff]  ;;  %v292_v5 = vld [vmem:[%s239_s20 + $0x50] sm:$0xff]  ;;  %289 = vst [vmem:[%s235_s30 + $0x18] sm:$0xff] %v288_v3 }
  0x1b   : > { %291 = vst [vmem:[%s235_s30 + $0x20] sm:$0xff] %v290_v4  ;;  %293 = vst [vmem:[%s235_s30 + $0x28] sm:$0xff] %v292_v5  ;;  %v294_v6 = vld [vmem:[%s239_s20 + $0x60] sm:$0xff]  ;;  %v296_v7 = vld [vmem:[%s239_s20 + $0x70] sm:$0xff] }
  0x1c   : > { %295 = vst [vmem:[%s235_s30 + $0x30] sm:$0xff] %v294_v6  ;;  %297 = vst [vmem:[%s235_s30 + $0x38] sm:$0xff] %v296_v7 }
  0x1d PF: > { %p2073_p9 = scmp.ge.s32.totalorder %s2453_s27, 1  ;;  %p302_p10 = scmp.lt.s32.totalorder %s2453_s27, 5 }
  0x1f   : > { %p303_p11 = pnand %p2073_p9, %p302_p10 }
  0x20   : > { %s309_s7 = sand.u32 (!%p303_p11), 1, %s2429_s21   ;;  %p342_p12 = scmp.lt.s32.totalorder (!%p303_p11), %s2441_s24, 1 }
  0x21   : > { %306 = sbr.rel (%p303_p11) target bundleno = 1528 (0x5f8), region = 78  ;;  %s2560_s9 = sshll.u32 (!%p303_p11), %s309_s7, 6 }
  0x22   : > { %s2566_s13 = scalar_lea.vmem (!%p303_p11), [#allocation2], %s2560_s9  ;;  %s3331_s16 = scalar_lea.vmem (!%p303_p11), [#allocation3], %s2560_s9 }
  0x26   : > { %v2267_v8 = vld [vmem:[%s3386_s2] sm:$0xff]   ;;  %vm600_vm0 = vcmask 523264   ;;  %v378_v9 = vld [vmem:[%s2566_s13 + $0x30] sm:$0xff]  ;;  %v379_v10 = vld [vmem:[%s2566_s13 + $0x38] sm:$0xff]  ;;  %s343_s21 = scalar_select %p342_p12, %s2441_s24, 1  ;;  %v2455_v12 = vmov 0  }
  0x27   : > { %v376_v11 = vld [vmem:[%s2566_s13 + $0x20] sm:$0xff]  ;;  %2168 = vmatprep.mubr.msk.bf16.mxu0 %vm600_vm0, %v2267_v8  ;;  %1042 = vmatprep.mubr.bf16.mxu1 %v2455_v12  ;;  %v383_v13 = vpack.c.bf16 %v379_v10, %v378_v9  ;;  %v377_v14 = vld [vmem:[%s2566_s13 + $0x28] sm:$0xff]  ;;  %v374_v16 = vld [vmem:[%s2566_s13 + $0x10] sm:$0xff]  ;;  %s2131_s9 = sshll.u32 (%p2539_p6), %s2441_s24, 4 }
  0x28   : > { %2265 = vset.pattern.permute.xlu0 %v2455_v12  ;;  %2266 = vset.pattern.permute.xlu1 %v2455_v12  ;;  %s2135_s14 = sshll.u32 %s343_s21, 7  ;;  %v382_v15 = vpack.c.bf16 %v377_v14, %v376_v11  ;;  %v375_v17 = vld [vmem:[%s2566_s13 + $0x18] sm:$0xff]  ;;  %v372_v21 = vld [vmem:[%s2566_s13] sm:$0xff]  ;;  %v373_v22 = vld [vmem:[%s2566_s13 + $0x8] sm:$0xff] }
  0x29   : > { %2160 = vmatprep.subr.bf16.mxu0 %v383_v13  ;;  %s2582_s17 = scalar_lea.vmem %s3384_s0, %s2135_s14  ;;  %v381_v27 = vpack.c.bf16 %v375_v17, %v374_v16  ;;  %v380_v37 = vpack.c.bf16 %v373_v22, %v372_v21  ;;  %v432_v41 = vld [vmem:[%s3387_s3] sm:$0xff]  ;;  %v433_v44 = vld [vmem:[%s3387_s3 + $0x8] sm:$0xff]  ;;  %v434_v47 = vld [vmem:[%s3387_s3 + $0x10] sm:$0xff] }
  0x2a   : > { %2161 = vmatpush3.bf16.msra.mxu0 %v383_v13  ;;  %v361_v18 = vld [vmem:[%s2582_s17 + $0x68] sm:$0xff]  ;;  %v363_v19 = vld [vmem:[%s2582_s17 + $0x78] sm:$0xff]  ;;  %v360_v20 = vld [vmem:[%s2582_s17 + $0x60] sm:$0xff]  ;;  %482 = vperm.xlu0 %2265, %v432_v41  }
  0x2b   : > { %v371_v23 = vpack.c.bf16 %v363_v19, %v361_v18  ;;  %2162 = vmatprep.subr.bf16.mxu0 %v382_v15  ;;  %v362_v24 = vld [vmem:[%s2582_s17 + $0x70] sm:$0xff]  ;;  %v357_v25 = vld [vmem:[%s2582_s17 + $0x48] sm:$0xff]  ;;  %v359_v26 = vld [vmem:[%s2582_s17 + $0x58] sm:$0xff]  ;;  %492 = vperm.xlu1 %2266, %v434_v47  }
  0x2c   : > { %v370_v28 = vpack.c.bf16 %v362_v24, %v360_v20  ;;  %v369_v29 = vpack.c.bf16 %v359_v26, %v357_v25  ;;  %v356_v30 = vld [vmem:[%s2582_s17 + $0x40] sm:$0xff]  ;;  %v358_v31 = vld [vmem:[%s2582_s17 + $0x50] sm:$0xff]  ;;  %v353_v32 = vld [vmem:[%s2582_s17 + $0x28] sm:$0xff] }
  0x2d   : > { %1018 = vmatprep.subr.bf16.mxu1 %v371_v23  ;;  %v355_v33 = vld [vmem:[%s2582_s17 + $0x38] sm:$0xff]  ;;  %v368_v34 = vpack.c.bf16 %v358_v31, %v356_v30  ;;  %v352_v35 = vld [vmem:[%s2582_s17 + $0x20] sm:$0xff]  ;;  %v354_v38 = vld [vmem:[%s2582_s17 + $0x30] sm:$0xff] }
  0x2e   : > { %1019 = vmatpush1.bf16.msra.mxu1 %v370_v28  ;;  %2163 = vmatpush3.bf16.msra.mxu0 %v382_v15  ;;  %v367_v36 = vpack.c.bf16 %v355_v33, %v353_v32  ;;  %v349_v39 = vld [vmem:[%s2582_s17 + $0x8] sm:$0xff]  ;;  %v351_v40 = vld [vmem:[%s2582_s17 + $0x18] sm:$0xff]  ;;  %v348_v42 = vld [vmem:[%s2582_s17] sm:$0xff]  ;;  %v366_v43 = vpack.c.bf16 %v354_v38, %v352_v35 }
  0x2f   : > { %1020 = vmatprep.subr.bf16.mxu1 %v369_v29  ;;  %2164 = vmatprep.subr.bf16.mxu0 %v381_v27  ;;  %v365_v45 = vpack.c.bf16 %v351_v40, %v349_v39  ;;  %v350_v46 = vld [vmem:[%s2582_s17 + $0x10] sm:$0xff]  ;;  %v2268_v48 = vld [vmem:[%s3386_s2 + $0x8] sm:$0xff]   ;;  %v436_v51 = vld [vmem:[%s3387_s3 + $0x20] sm:$0xff] }
  0x30   : > { %v2270_v49 = vld [vmem:[%s3386_s2 + $0x10] sm:$0xff]   ;;  %487 = vperm.xlu0 %2265, %v433_v44   ;;  %v364_v50 = vpack.c.bf16 %v350_v46, %v348_v42  ;;  %v435_v52 = vld [vmem:[%s3387_s3 + $0x18] sm:$0xff]  ;;  %v2269_v53 = vld [vmem:[%s3386_s2 + $0x40] sm:$0xff]  }
  0x31   : > { %497 = vperm.xlu1 %2266, %v435_v52   ;;  %v437_v54 = vld [vmem:[%s3387_s3 + $0x28] sm:$0xff]  ;;  %v438_v55 = vld [vmem:[%s3387_s3 + $0x30] sm:$0xff]  ;;  %v2271_v56 = vld [vmem:[%s3386_s2 + $0x18] sm:$0xff]  }
  0x32   : > { %1021 = vmatpush1.bf16.msra.mxu1 %v368_v34  ;;  %2165 = vmatpush3.bf16.msra.mxu0 %v381_v27  ;;  %v2273_v57 = vld [vmem:[%s3386_s2 + $0x20] sm:$0xff]   ;;  %v439_v58 = vld [vmem:[%s3387_s3 + $0x38] sm:$0xff]  ;;  %v2272_v60 = vld [vmem:[%s3386_s2 + $0x48] sm:$0xff]  }
  0x33   : > { %1022 = vmatprep.subr.bf16.mxu1 %v367_v36  ;;  %2166 = vmatprep.subr.bf16.mxu0 %v380_v37  ;;  %v440_v59 = vld [vmem:[%s3387_s3 + $0x40] sm:$0xff]  ;;  %v441_v61 = vld [vmem:[%s3387_s3 + $0x48] sm:$0xff]  ;;  %v442_v62 = vld [vmem:[%s3387_s3 + $0x50] sm:$0xff] }
  0x34   : > { %502 = vperm.xlu0 %2265, %v436_v51   ;;  %v2274_v63 = vld [vmem:[%s3386_s2 + $0x28] sm:$0xff]   ;;  %v2276_v0 = vld [vmem:[%s3386_s2 + $0x30] sm:$0xff]   ;;  %v443_v1 = vld [vmem:[%s3387_s3 + $0x58] sm:$0xff] }
  0x35   : > { %507 = vperm.xlu1 %2266, %v437_v54   ;;  %v444_v2 = vld [vmem:[%s3387_s3 + $0x60] sm:$0xff]  ;;  %v2275_v3 = vld [vmem:[%s3386_s2 + $0x50] sm:$0xff]   ;;  %v445_v4 = vld [vmem:[%s3387_s3 + $0x68] sm:$0xff] }
  0x36   : > { %1023 = vmatpush1.bf16.msra.mxu1 %v366_v43  ;;  %2167 = vmatpush3.bf16.msra.mxu0 %v380_v37  ;;  %v446_v5 = vld [vmem:[%s3387_s3 + $0x70] sm:$0xff]  ;;  %v2277_v6 = vld [vmem:[%s3386_s2 + $0x38] sm:$0xff]   ;;  %v460_v11 = vld [vmem:[%s3387_s3 + $0xe0] sm:$0xff] }
  0x37   : > { %1024 = vmatprep.subr.bf16.mxu1 %v365_v45  ;;  %v447_v7 = vld [vmem:[%s3387_s3 + $0x78] sm:$0xff]  ;;  %v462_v8 = vld [vmem:[%s3387_s3 + $0xf0] sm:$0xff]  ;;  %v461_v13 = vld [vmem:[%s3387_s3 + $0xe8] sm:$0xff] }
  0x38   : > { %512 = vperm.xlu0 %2265, %v438_v55   ;;  %v2278_v9 = vld [vmem:[%s3386_s2 + $0x58] sm:$0xff]   ;;  %v458_v14 = vld [vmem:[%s3387_s3 + $0xd0] sm:$0xff]  ;;  %v2279_v15 = vld [vmem:[%s3386_s2 + $0x60] sm:$0xff]  }
  0x39   : > { %2169 = vmatmul.mubr.msk.bf16.vlgmr.msra.gmra.mxu0 %vm600_vm0, %v2268_v48  ;;  %517 = vperm.xlu1 %2266, %v439_v58   ;;  %v463_v10 = vld [vmem:[%s3387_s3 + $0xf8] sm:$0xff]  ;;  %v456_v17 = vld [vmem:[%s3387_s3 + $0xc0] sm:$0xff]  ;;  %v457_v18 = vld [vmem:[%s3387_s3 + $0xc8] sm:$0xff] }
  0x3a   : > { %1025 = vmatpush1.bf16.msra.mxu1 %v364_v50  ;;  %2172 = vmatprep.mubr.msk.bf16.mxu0 %vm600_vm0, %v2270_v49  ;;  %v459_v16 = vld [vmem:[%s3387_s3 + $0xd8] sm:$0xff]  ;;  %v454_v19 = vld [vmem:[%s3387_s3 + $0xb0] sm:$0xff]  ;;  %v2280_v20 = vld [vmem:[%s3386_s2 + $0x68] sm:$0xff]  }
  0x3b   : > { %v455_v21 = vld [vmem:[%s3387_s3 + $0xb8] sm:$0xff]  ;;  %v452_v22 = vld [vmem:[%s3387_s3 + $0xa0] sm:$0xff]  ;;  %v453_v23 = vld [vmem:[%s3387_s3 + $0xa8] sm:$0xff] }
  0x3c   : > { %522 = vperm.xlu0 %2265, %v440_v59   ;;  %v450_v24 = vld [vmem:[%s3387_s3 + $0x90] sm:$0xff]  ;;  %v451_v26 = vld [vmem:[%s3387_s3 + $0x98] sm:$0xff]  ;;  %v448_v27 = vld [vmem:[%s3387_s3 + $0x80] sm:$0xff] }
  0x3d   : > { %2110 = vmatmul.mubr.msk.bf16.vlgmr.msra.gmra.mxu1 %vm600_vm0, %v2269_v53  ;;  %527 = vperm.xlu1 %2266, %v441_v61   ;;  %v2281_v25 = vld [vmem:[%s3386_s2 + $0x70] sm:$0xff]   ;;  %v449_v28 = vld [vmem:[%s3387_s3 + $0x88] sm:$0xff]  ;;  %v2282_v29 = vld [vmem:[%s3386_s2 + $0x78] sm:$0xff]  }
  0x3e   : > { %1052 = vmatprep.mubr.bf16.mxu1 %v2455_v12 }
  0x40   : > { %532 = vperm.xlu0 %2265, %v442_v62  }
  0x41   : > { %2173 = vmatmul.mubr.msk.bf16.gmra.mxu0 %vm600_vm0, %v2271_v56  ;;  %537 = vperm.xlu1 %2266, %v443_v1  }
  0x42   : > { %2176 = vmatprep.mubr.msk.bf16.mxu0 %vm600_vm0, %v2273_v57 }
  0x44   : > { %542 = vperm.xlu0 %2265, %v444_v2  }
  0x45   : > { %2111 = vmatmul.mubr.msk.bf16.gmra.mxu1 %vm600_vm0, %v2272_v60  ;;  %547 = vperm.xlu1 %2266, %v445_v4  }
  0x46   : > { %1062 = vmatprep.mubr.bf16.mxu1 %v2455_v12 }
  0x48   : > { %552 = vperm.xlu0 %2265, %v446_v5  }
  0x49   : > { %2177 = vmatmul.mubr.msk.bf16.gmra.mxu0 %vm600_vm0, %v2274_v63  ;;  %557 = vperm.xlu1 %2266, %v447_v7  }
  0x4a   : > { %2180 = vmatprep.mubr.msk.bf16.mxu0 %vm600_vm0, %v2276_v0 }
  0x4c   : > { %794 = vperm.xlu0 %2265, %v462_v8  }
  0x4d   : > { %2112 = vmatmul.mubr.msk.bf16.gmra.mxu1 %vm600_vm0, %v2275_v3  ;;  %799 = vperm.xlu1 %2266, %v463_v10  }
  0x4e   : > { %1072 = vmatprep.mubr.bf16.mxu1 %v2455_v12 }
  0x50   : > { %784 = vperm.xlu0 %2265, %v460_v11  }
  0x51   : > { %2181 = vmatmul.mubr.msk.bf16.gmra.mxu0 %vm600_vm0, %v2277_v6  ;;  %789 = vperm.xlu1 %2266, %v461_v13  }
  0x52   : > { %1291 = vmatprep.mubr.bf16.mxu0 %v2455_v12 }
  0x54   : > { %774 = vperm.xlu0 %2265, %v458_v14  }
  0x55   : > { %2113 = vmatmul.mubr.msk.bf16.gmra.mxu1 %vm600_vm0, %v2278_v9  ;;  %779 = vperm.xlu1 %2266, %v459_v16  }
  0x56   : > { %1082 = vmatprep.mubr.bf16.mxu1 %v2455_v12 }
  0x58   : > { %764 = vperm.xlu0 %2265, %v456_v17  }
  0x59   : > { %769 = vperm.xlu1 %2266, %v457_v18  }
  0x5c   : > { %754 = vperm.xlu0 %2265, %v454_v19  }
  0x5d   : > { %2114 = vmatmul.mubr.msk.bf16.gmra.mxu1 %vm600_vm0, %v2279_v15  ;;  %759 = vperm.xlu1 %2266, %v455_v21  }
  0x5e   : > { %1092 = vmatprep.mubr.bf16.mxu1 %v2455_v12 }
  0x60   : > { %744 = vperm.xlu0 %2265, %v452_v22  }
  0x61   : > { %749 = vperm.xlu1 %2266, %v453_v23  }
  0x64   : > { %734 = vperm.xlu0 %2265, %v450_v24  }
  0x65   : > { %2115 = vmatmul.mubr.msk.bf16.gmra.mxu1 %vm600_vm0, %v2280_v20  ;;  %739 = vperm.xlu1 %2266, %v451_v26  }
  0x66   : > { %1102 = vmatprep.mubr.bf16.mxu1 %v2455_v12 }
  0x68   : > { %724 = vperm.xlu0 %2265, %v448_v27  }
  0x69   : > { %729 = vperm.xlu1 %2266, %v449_v28  }
  0x6d   : > { %2116 = vmatmul.mubr.msk.bf16.gmra.mxu1 %vm600_vm0, %v2281_v25 }
  0x6e   : > { %1112 = vmatprep.mubr.bf16.mxu1 %v2455_v12 }
  0x75   : > { %2117 = vmatmul.mubr.msk.bf16.gmra.mxu1 %vm600_vm0, %v2282_v29 }
  0x76   : > { %1122 = vmatprep.mubr.bf16.mxu1 %v2455_v12 }
  0xa5   : > { %v483_v30 = vpop.permute.xlu0 %482 }
  0xa6   : > { %v493_v31 = vpop.permute.xlu1 %492 }
  0xab   : > { %v488_v32 = vpop.permute.xlu0 %487 }
  0xac   : > { %v498_v33 = vpop.permute.xlu1 %497 }
  0xaf   : > { %v503_v34 = vpop.permute.xlu0 %502 }
  0xb0   : > { %v2767_v35 = vpop.permute.xlu1 %507 }
  0xb3   : > { %v2769_v36 = vpop.permute.xlu0 %512 }
  0xb4   : > { %v2771_v37 = vpop.permute.xlu1 %517 }
  0xb7   : > { %v2773_v38 = vpop.permute.xlu0 %522 }
  0xb8   : > { %v2775_v39 = vpop.permute.xlu1 %527 }
  0xbb   : > { %v2777_v40 = vpop.permute.xlu0 %532 }
  0xbc   : > { %v2779_v41 = vpop.permute.xlu1 %537 }
  0xbf   : > { %v2781_v42 = vpop.permute.xlu0 %542 }
  0xc0   : > { %v2783_v43 = vpop.permute.xlu1 %547 }
  0xc3   : > { %v2785_v44 = vpop.permute.xlu0 %552 }
  0xc4   : > { %v2787_v45 = vpop.permute.xlu1 %557 }
  0xc7   : > { %v2789_v46 = vpop.permute.xlu0 %794 }
  0xc8   : > { %v2791_v47 = vpop.permute.xlu1 %799 }
  0xcb   : > { %v2793_v48 = vpop.permute.xlu0 %784 }
  0xcc   : > { %v2795_v49 = vpop.permute.xlu1 %789 }
  0xcf   : > { %v2797_v50 = vpop.permute.xlu0 %774 }
  0xd0   : > { %v2799_v51 = vpop.permute.xlu1 %779 }
  0xd3   : > { %v2801_v52 = vpop.permute.xlu0 %764 }
  0xd4   : > { %v2803_v53 = vpop.permute.xlu1 %769 }
  0xd7   : > { %v2805_v54 = vpop.permute.xlu0 %754 }
  0xd8   : > { %v2807_v55 = vpop.permute.xlu1 %759 }
  0xdb   : > { %v2809_v56 = vpop.permute.xlu0 %744 }
  0xdc   : > { %v2811_v57 = vpop.permute.xlu1 %749 }
  0xdf   : > { %v735_v58 = vpop.permute.xlu0 %734 }
  0xe0   : > { %v740_v59 = vpop.permute.xlu1 %739 }
  0xe3   : > { %v725_v1 = vpop.permute.xlu0 %724 }
  0xe4   : > { %v730_v2 = vpop.permute.xlu1 %729 }
  0xf9   : > { %v2170_v60 = vpop.f32.mrf.mxu0 }
  0xfa   : > { %v668_v11 = vadd.f32 %v2170_v60, %v493_v31 }
  0xfb   : > { %v659_v61 = vpop.f32.mrf.mxu0 }
  0xfc   : > { %v660_v62 = vadd.f32 %v659_v61, %v483_v30 }
  0xfd   : > { %v1044_v63 = vpop.f32.mrf.mxu1  ;;  %v2171_v0 = vpop.f32.mrf.mxu0 }
  0xfe   : > { %1203 = vxpose.xlu0.b32.start [1/16] %v660_v62, 128  ;;  %v2813_v8 = vadd.f32 %v1044_v63, %v725_v1  ;;  %v671_v20 = vadd.f32 %v2171_v0, %v498_v33 }
  0xff   : > { %v1046_v3 = vpop.f32.mrf.mxu1  ;;  %v662_v4 = vpop.f32.mrf.mxu0 }
 0x100   : > { %v663_v5 = vadd.f32 %v662_v4, %v488_v32  ;;  %v2817_v13 = vadd.f32 %v1046_v3, %v725_v1 }
 0x101   : > { %v1048_v6 = vpop.f32.mrf.mxu1  ;;  %v2174_v7 = vpop.f32.mrf.mxu0 }
 0x102   : > { %v2815_v9 = vadd.f32 %v1048_v6, %v730_v2  ;;  %1204 = vxpose.xlu0.b32.cont [2/16] %v663_v5, 128 }
 0x103   : > { %v1050_v10 = vpop.f32.mrf.mxu1  ;;  %v675_v16 = vpop.f32.mrf.mxu0 }
 0x104   : > { %v1243_v14 = vpack.c.bf16 %v2815_v9, %v2813_v8  ;;  %v2821_v15 = vadd.f32 %v1050_v10, %v730_v2  ;;  %v676_v26 = vadd.f32 %v675_v16, %v503_v34 }
 0x105   : > { %v1054_v17 = vpop.f32.mrf.mxu1  ;;  %v2175_v21 = vpop.f32.mrf.mxu0 }
 0x106   : > { %v1244_v18 = vpack.c.bf16 %v2821_v15, %v2817_v13  ;;  %1205 = vxpose.xlu0.b32.cont [3/16] %v668_v11, 128  ;;  %v2825_v23 = vadd.f32 %v1054_v17, %v735_v58  ;;  %v687_v1 = vadd.f32 %v2175_v21, %v2771_v37 }
 0x107   : > { %v1056_v19 = vpop.f32.mrf.mxu1  ;;  %v678_v30 = vpop.f32.mrf.mxu0 }
 0x108   : > { %v2829_v27 = vadd.f32 %v1056_v19, %v735_v58  ;;  %v679_v60 = vadd.f32 %v678_v30, %v2767_v35 }
 0x109   : > { %v1058_v22 = vpop.f32.mrf.mxu1  ;;  %v2178_v61 = vpop.f32.mrf.mxu0 }
 0x10a   : > { %v2827_v24 = vadd.f32 %v1058_v22, %v740_v59  ;;  %1206 = vxpose.xlu0.b32.cont [4/16] %v671_v20, 128  ;;  %v700_v37 = vadd.f32 %v2178_v61, %v2777_v40 }
 0x10b   : > { %v1060_v25 = vpop.f32.mrf.mxu1  ;;  %v691_v62 = vpop.f32.mrf.mxu0 }
 0x10c   : > { %v1245_v28 = vpack.c.bf16 %v2827_v24, %v2825_v23  ;;  %v2833_v29 = vadd.f32 %v1060_v25, %v740_v59  ;;  %v684_v59 = vadd.f32 %v2174_v7, %v2769_v36  ;;  %v692_v4 = vadd.f32 %v691_v62, %v2773_v38 }
 0x10d   : > { %v2835_v31 = vpop.f32.mrf.mxu1  ;;  %v2179_v2 = vpop.f32.mrf.mxu0 }
 0x10e   : > { %v1246_v32 = vpack.c.bf16 %v2833_v29, %v2829_v27  ;;  %1207 = vxpose.xlu0.b32.cont [5/16] %v676_v26, 128  ;;  %v703_v21 = vadd.f32 %v2179_v2, %v2779_v41 }
 0x10f   : > { %v2839_v33 = vpop.f32.mrf.mxu1  ;;  %v694_v5 = vpop.f32.mrf.mxu0 }
 0x110   : > { %v695_v7 = vadd.f32 %v694_v5, %v2775_v39 }
 0x111   : > { %v2842_v34 = vpop.f32.mrf.mxu1  ;;  %v2182_v10 = vpop.f32.mrf.mxu0 }
 0x112   : > { %1208 = vxpose.xlu0.b32.cont [6/16] %v679_v60, 128  ;;  %v716_v61 = vadd.f32 %v2182_v10, %v2785_v44 }
 0x113   : > { %v2844_v58 = vpop.f32.mrf.mxu1  ;;  %v707_v17 = vpop.f32.mrf.mxu0 }
 0x114   : > { %v708_v26 = vadd.f32 %v707_v17, %v2781_v42 }
 0x115   : > { %v2847_v63 = vpop.f32.mrf.mxu1  ;;  %v2183_v38 = vpop.f32.mrf.mxu0 }
 0x116   : > { %1209 = vxpose.xlu0.b32.cont [7/16] %v684_v59, 128  ;;  %v719_v2 = vadd.f32 %v2183_v38, %v2787_v45 }
 0x117   : > { %v2849_v0 = vpop.f32.mrf.mxu1  ;;  %v710_v30 = vpop.f32.mrf.mxu0 }
 0x118   : > { %v711_v59 = vadd.f32 %v710_v30, %v2783_v43 }
 0x119   : > { %v2852_v3 = vpop.f32.mrf.mxu1 }
 0x11a   : > { %1210 = vxpose.xlu0.b32.cont [8/16] %v687_v1, 128 }
 0x11b   : > { %v2854_v35 = vpop.f32.mrf.mxu1 }
 0x11d   : > { %v2857_v6 = vpop.f32.mrf.mxu1 }
 0x11e   : > { %1211 = vxpose.xlu0.b32.cont [9/16] %v692_v4, 128 }
 0x11f   : > { %v1086_v36 = vpop.f32.mrf.mxu1 }
 0x121   : > { %v1088_v11 = vpop.f32.mrf.mxu1 }
 0x122   : > { %1212 = vxpose.xlu0.b32.cont [10/16] %v695_v7, 128 }
 0x123   : > { %v1090_v16 = vpop.f32.mrf.mxu1 }
 0x125   : > { %v1094_v19 = vpop.f32.mrf.mxu1 }
 0x126   : > { %1213 = vxpose.xlu0.b32.cont [11/16] %v700_v37, 128 }
 0x127   : > { %v1096_v20 = vpop.f32.mrf.mxu1 }
 0x129   : > { %v1098_v22 = vpop.f32.mrf.mxu1 }
 0x12a   : > { %1214 = vxpose.xlu0.b32.cont [12/16] %v703_v21, 128 }
 0x12b   : > { %v1100_v25 = vpop.f32.mrf.mxu1 }
 0x12c   : > { %v1101_v45 = vadd.f32 %v1100_v25, %v2799_v51  ;;  %v1089_v25 = vadd.f32 %v1088_v11, %v2803_v53 }
 0x12d   : > { %v1104_v39 = vpop.f32.mrf.mxu1 }
 0x12e   : > { %1215 = vxpose.xlu0.b32.cont [13/16] %v708_v26, 128  ;;  %v1105_v30 = vadd.f32 %v1104_v39, %v2793_v48 }
 0x12f   : > { %v1106_v60 = vpop.f32.mrf.mxu1 }
 0x130   : > { %v1107_v44 = vadd.f32 %v1106_v60, %v2793_v48  ;;  %v1081_v48 = vadd.f32 %v2854_v35, %v2807_v55  ;;  %v1075_v35 = vadd.f32 %v2847_v63, %v2805_v54 }
 0x131   : > { %v1108_v62 = vpop.f32.mrf.mxu1 }
 0x132   : > { %1216 = vxpose.xlu0.b32.cont [14/16] %v711_v59, 128  ;;  %v1109_v21 = vadd.f32 %v1108_v62, %v2795_v49  ;;  %v1097_v59 = vadd.f32 %v1096_v20, %v2797_v50 }
 0x133   : > { %v1110_v40 = vpop.f32.mrf.mxu1 }
 0x134   : > { %v1111_v7 = vadd.f32 %v1110_v40, %v2795_v49  ;;  %v1255_v40 = vpack.c.bf16 %v1109_v21, %v1105_v30  ;;  %v1254_v60 = vpack.c.bf16 %v1101_v45, %v1097_v59  ;;  %v1087_v49 = vadd.f32 %v1086_v36, %v2801_v52  ;;  %v2283_v30 = vld [vmem:[%s3386_s2 + $0x80] sm:$0xff]  }
 0x135   : > { %v1114_v1 = vpop.f32.mrf.mxu1  ;;  %2118 = vmatmul.mubr.msk.bf16.gmra.mxu1 %vm600_vm0, %v2283_v30 }
 0x136   : > { %1217 = vxpose.xlu0.b32.cont [15/16] %v716_v61, 128  ;;  %v1115_v17 = vadd.f32 %v1114_v1, %v2789_v46  ;;  %v1256_v38 = vpack.c.bf16 %v1111_v7, %v1107_v44  ;;  %v1095_v61 = vadd.f32 %v1094_v19, %v2797_v50  ;;  %v1079_v50 = vadd.f32 %v2852_v3, %v2807_v55 }
 0x137   : > { %v1116_v41 = vpop.f32.mrf.mxu1  ;;  %v1065_v55 = vadd.f32 %v2835_v31, %v2809_v56  ;;  %1132 = vmatprep.mubr.bf16.mxu1 %v2455_v12 }
 0x138   : > { %v1117_v37 = vadd.f32 %v1116_v41, %v2789_v46  ;;  %v1091_v46 = vadd.f32 %v1090_v16, %v2803_v53  ;;  %v1077_v16 = vadd.f32 %v2849_v0, %v2805_v54  ;;  %v1071_v53 = vadd.f32 %v2844_v58, %v2811_v57 }
 0x139   : > { %v1118_v4 = vpop.f32.mrf.mxu1  ;;  %v1069_v0 = vadd.f32 %v2842_v34, %v2811_v57 }
 0x13a   : > { %1218 = vxpose.xlu0.b32.end [16/16] %v719_v2, 128  ;;  %v1119_v42 = vadd.f32 %v1118_v4, %v2791_v47  ;;  %v1252_v20 = vpack.c.bf16 %v1091_v46, %v1087_v49  ;;  %v1250_v11 = vpack.c.bf16 %v1081_v48, %v1077_v16 }
 0x13b   : > { %v1120_v5 = vpop.f32.mrf.mxu1  ;;  %v1247_v58 = vpack.c.bf16 %v1069_v0, %v1065_v55 }
 0x13c   : > { %v1121_v43 = vadd.f32 %v1120_v5, %v2791_v47  ;;  %v1257_v26 = vpack.c.bf16 %v1119_v42, %v1115_v17  ;;  %v1099_v47 = vadd.f32 %v1098_v22, %v2799_v51  ;;  %v1085_v51 = vadd.f32 %v2857_v6, %v2801_v52 }
 0x13d   : > { %v1067_v52 = vadd.f32 %v2839_v33, %v2809_v56  ;;  %v1249_v6 = vpack.c.bf16 %v1079_v50, %v1075_v35 }
 0x13e   : > { %v1258_v10 = vpack.c.bf16 %v1121_v43, %v1117_v37  ;;  %v1253_v62 = vpack.c.bf16 %v1099_v47, %v1095_v61  ;;  %v1251_v36 = vpack.c.bf16 %v1089_v25, %v1085_v51 }
 0x13f   : > { %v1248_v19 = vpack.c.bf16 %v1071_v53, %v1067_v52 }
 0x140   : > { %1259 = vmatprep.subr.bf16.mxu0 %v1258_v10 }
 0x141   : > { %1260 = vmatpush1.bf16.msra.mxu0 %v1257_v26 }
 0x142   : > { %1261 = vmatprep.subr.bf16.mxu0 %v1256_v38 }
 0x145   : > { %1262 = vmatpush1.bf16.msra.mxu0 %v1255_v40 }
 0x146   : > { %1263 = vmatprep.subr.bf16.mxu0 %v1254_v60 }
 0x149   : > { %1264 = vmatpush1.bf16.msra.mxu0 %v1253_v62 }
 0x14a   : > { %1265 = vmatprep.subr.bf16.mxu0 %v1252_v20 }
 0x14d   : > { %1266 = vmatpush1.bf16.msra.mxu0 %v1251_v36 }
 0x14e   : > { %1267 = vmatprep.subr.bf16.mxu0 %v1250_v11 }
 0x151   : > { %1268 = vmatpush1.bf16.msra.mxu0 %v1249_v6 }
 0x152   : > { %1269 = vmatprep.subr.bf16.mxu0 %v1248_v19 }
 0x155   : > { %1270 = vmatpush1.bf16.msra.mxu0 %v1247_v58  ;;  %v2284_v58 = vld [vmem:[%s3386_s2 + $0x88] sm:$0xff]  }
 0x156   : > { %1271 = vmatprep.subr.bf16.mxu0 %v1246_v32  ;;  %2119 = vmatmul.mubr.msk.bf16.gmra.mxu1 %vm600_vm0, %v2284_v58 }
 0x157   : > { %1142 = vmatprep.mubr.bf16.mxu1 %v2455_v12 }
 0x159   : > { %1272 = vmatpush1.bf16.msra.mxu0 %v1245_v28 }
 0x15a   : > { %1273 = vmatprep.subr.bf16.mxu0 %v1244_v18 }
 0x15d   : > { %1274 = vmatpush1.bf16.msra.mxu0 %v1243_v14 }
 0x17a   : > { %v1219_v54 = vpop.trf.xlu0 }
 0x17e   : > { %v1220_v56 = vpop.trf.xlu0 }
 0x17f   : > { %v1235_v57 = vpack.c.bf16 %v1220_v56, %v1219_v54 }
 0x181   : > { %1292 = vmatmul.mubr.bf16.vlgmr.msra.gmra.mxu0 %v1235_v57  ;;  %v2285_v57 = vld [vmem:[%s3386_s2 + $0x90] sm:$0xff]  }
 0x182   : > { %v1221_v31 = vpop.trf.xlu0  ;;  %1301 = vmatprep.mubr.bf16.mxu0 %v2455_v12  ;;  %2120 = vmatmul.mubr.msk.bf16.gmra.mxu1 %vm600_vm0, %v2285_v57 }
 0x183   : > { %1152 = vmatprep.mubr.bf16.mxu1 %v2455_v12 }
 0x186   : > { %v1222_v27 = vpop.trf.xlu0 }
 0x187   : > { %v1236_v29 = vpack.c.bf16 %v1222_v27, %v1221_v31 }
 0x189   : > { %1302 = vmatmul.mubr.bf16.gmra.mxu0 %v1236_v29  ;;  %v2286_v29 = vld [vmem:[%s3386_s2 + $0x98] sm:$0xff]  }
 0x18a   : > { %v1223_v23 = vpop.trf.xlu0  ;;  %1311 = vmatprep.mubr.bf16.mxu0 %v2455_v12  ;;  %2121 = vmatmul.mubr.msk.bf16.gmra.mxu1 %vm600_vm0, %v2286_v29 }
 0x18b   : > { %1162 = vmatprep.mubr.bf16.mxu1 %v2455_v12 }
 0x18e   : > { %v1224_v24 = vpop.trf.xlu0 }
 0x18f   : > { %v1237_v13 = vpack.c.bf16 %v1224_v24, %v1223_v23 }
 0x191   : > { %1312 = vmatmul.mubr.bf16.gmra.mxu0 %v1237_v13  ;;  %v2287_v13 = vld [vmem:[%s3386_s2 + $0xa0] sm:$0xff]  }
 0x192   : > { %v1225_v15 = vpop.trf.xlu0  ;;  %1321 = vmatprep.mubr.bf16.mxu0 %v2455_v12  ;;  %2122 = vmatmul.mubr.msk.bf16.gmra.mxu1 %vm600_vm0, %v2287_v13 }
 0x193   : > { %1172 = vmatprep.mubr.bf16.mxu1 %v2455_v12 }
 0x196   : > { %v1226_v8 = vpop.trf.xlu0 }
 0x197   : > { %v1238_v9 = vpack.c.bf16 %v1226_v8, %v1225_v15 }
 0x199   : > { %1322 = vmatmul.mubr.bf16.gmra.mxu0 %v1238_v9  ;;  %v2288_v9 = vld [vmem:[%s3386_s2 + $0xa8] sm:$0xff]  }
 0x19a   : > { %v1227_v14 = vpop.trf.xlu0  ;;  %1331 = vmatprep.mubr.bf16.mxu0 %v2455_v12  ;;  %2123 = vmatmul.mubr.msk.bf16.gmra.mxu1 %vm600_vm0, %v2288_v9 }
 0x19b   : > { %1182 = vmatprep.mubr.bf16.mxu1 %v2455_v12 }
 0x19e   : > { %v1228_v18 = vpop.trf.xlu0 }
 0x19f   : > { %v1239_v28 = vpack.c.bf16 %v1228_v18, %v1227_v14 }
 0x1a1   : > { %1332 = vmatmul.mubr.bf16.gmra.mxu0 %v1239_v28  ;;  %v2289_v28 = vld [vmem:[%s3386_s2 + $0xb0] sm:$0xff]  }
 0x1a2   : > { %v1229_v32 = vpop.trf.xlu0  ;;  %1341 = vmatprep.mubr.bf16.mxu0 %v2455_v12  ;;  %2124 = vmatmul.mubr.msk.bf16.gmra.mxu1 %vm600_vm0, %v2289_v28 }
 0x1a3   : > { %1192 = vmatprep.mubr.bf16.mxu1 %v2455_v12 }
 0x1a6   : > { %v1230_v33 = vpop.trf.xlu0 }
 0x1a7   : > { %v1240_v34 = vpack.c.bf16 %v1230_v33, %v1229_v32  ;;  %v2290_v33 = vld [vmem:[%s3386_s2 + $0xb8] sm:$0xff]  }
 0x1a9   : > { %1342 = vmatmul.mubr.bf16.gmra.mxu0 %v1240_v34 }
 0x1aa   : > { %v1231_v63 = vpop.trf.xlu0  ;;  %1351 = vmatprep.mubr.bf16.mxu0 %v2455_v12  ;;  %2125 = vmatmul.mubr.msk.bf16.gmra.mxu1 %vm600_vm0, %v2290_v33 }
 0x1ae   : > { %v1232_v3 = vpop.trf.xlu0 }
 0x1af   : > { %v1241_v22 = vpack.c.bf16 %v1232_v3, %v1231_v63 }
 0x1b1   : > { %1352 = vmatmul.mubr.bf16.gmra.mxu0 %v1241_v22 }
 0x1b2   : > { %v1233_v39 = vpop.trf.xlu0  ;;  %1361 = vmatprep.mubr.bf16.mxu0 %v2455_v12 }
 0x1b6   : > { %v1234_v1 = vpop.trf.xlu0 }
 0x1b7   : > { %v1242_v41 = vpack.c.bf16 %v1234_v1, %v1233_v39 }
 0x1b9   : > { %1362 = vmatmul.mubr.bf16.gmra.mxu0 %v1242_v41 }
 0x241   : > { %v2918_v2 = vpop.f32.mrf.mxu0 }
 0x243   : > { %v2920_v4 = vpop.f32.mrf.mxu0 }
 0x244   : > { %v1372_v32 = vmax.f32 %v2918_v2, %v2920_v4 }
 0x245   : > { %v2922_v42 = vpop.f32.mrf.mxu0 }
 0x247   : > { %v2924_v5 = vpop.f32.mrf.mxu0 }
 0x248   : > { %v1375_v7 = vmax.f32 %v2922_v42, %v2924_v5 }
 0x249   : > { %v2928_v37 = vpop.f32.mrf.mxu0 }
 0x24a   : > { %1376 = vmax.xlane.f32.xlu0 %v1375_v7 }
 0x24b   : > { %v2930_v43 = vpop.f32.mrf.mxu0 }
 0x24c   : > { %v1378_v14 = vmax.f32 %v2928_v37, %v2930_v43 }
 0x24d   : > { %v2932_v17 = vpop.f32.mrf.mxu0 }
 0x24f   : > { %v2934_v44 = vpop.f32.mrf.mxu0 }
 0x250   : > { %v1381_v18 = vmax.f32 %v2932_v17, %v2934_v44 }
 0x251   : > { %v2936_v10 = vpop.f32.mrf.mxu0 }
 0x253   : > { %v2938_v21 = vpop.f32.mrf.mxu0 }
 0x254   : > { %v1384_v15 = vmax.f32 %v2936_v10, %v2938_v21 }
 0x255   : > { %v2940_v26 = vpop.f32.mrf.mxu0 }
 0x257   : > { %v2942_v45 = vpop.f32.mrf.mxu0 }
 0x258   : > { %v1387_v8 = vmax.f32 %v2940_v26, %v2942_v45 }
 0x259   : > { %v2944_v38 = vpop.f32.mrf.mxu0 }
 0x25b   : > { %v2949_v59 = vpop.f32.mrf.mxu0 }
 0x25c   : > { %v1390_v23 = vmax.f32 %v2944_v38, %v2949_v59 }
 0x25d   : > { %v2953_v47 = vpop.f32.mrf.mxu0 }
 0x25f   : > { %v2955_v40 = vpop.f32.mrf.mxu0 }
 0x260   : > { %v1393_v24 = vmax.f32 %v2953_v47, %v2955_v40 }
 0x261   : > { %v2957_v46 = vpop.f32.mrf.mxu0 }
 0x263   : > { %v2959_v60 = vpop.f32.mrf.mxu0 }
 0x264   : > { %v1396_v31 = vmax.f32 %v2957_v46, %v2959_v60 }
 0x265   : > { %v2961_v61 = vpop.f32.mrf.mxu0 }
 0x267   : > { %v2963_v49 = vpop.f32.mrf.mxu0 }
 0x268   : > { %v1399_v27 = vmax.f32 %v2961_v61, %v2963_v49 }
 0x269   : > { %v2965_v25 = vpop.f32.mrf.mxu0 }
 0x26b   : > { %v2967_v62 = vpop.f32.mrf.mxu0 }
 0x26c   : > { %v1402_v54 = vmax.f32 %v2965_v25, %v2967_v62 }
 0x26d   : > { %v2969_v48 = vpop.f32.mrf.mxu0 }
 0x26f   : > { %v2971_v20 = vpop.f32.mrf.mxu0 }
 0x270   : > { %v1405_v56 = vmax.f32 %v2969_v48, %v2971_v20 }
 0x271   : > { %v2973_v51 = vpop.f32.mrf.mxu0 }
 0x273   : > { %v2975_v16 = vpop.f32.mrf.mxu0 }
 0x274   : > { %v1408_v19 = vmax.f32 %v2973_v51, %v2975_v16 }
 0x275   : > { %v2977_v50 = vpop.f32.mrf.mxu0 }
 0x277   : > { %v2979_v36 = vpop.f32.mrf.mxu0 }
 0x278   : > { %v1411_v55 = vmax.f32 %v2977_v50, %v2979_v36 }
 0x279   : > { %v1363_v53 = vpop.f32.mrf.mxu0 }
 0x27b   : > { %v1365_v11 = vpop.f32.mrf.mxu0 }
 0x27c   : > { %v1414_v35 = vmax.f32 %v1363_v53, %v1365_v11 }
 0x27d   : > { %v1367_v52 = vpop.f32.mrf.mxu0 }
 0x27e   : > { %1415 = vmax.xlane.f32.xlu1 %v1414_v35 }
 0x27f   : > { %v1369_v0 = vpop.f32.mrf.mxu0 }
 0x280   : > { %v1417_v6 = vmax.f32 %v1367_v52, %v1369_v0 }
 0x282   : > { %1418 = vmax.xlane.f32.xlu1 %v1417_v6 }
 0x286   : > { %1409 = vmax.xlane.f32.xlu1 %v1408_v19 }
 0x28a   : > { %1412 = vmax.xlane.f32.xlu1 %v1411_v55 }
 0x28e   : > { %1403 = vmax.xlane.f32.xlu1 %v1402_v54 }
 0x292   : > { %1406 = vmax.xlane.f32.xlu1 %v1405_v56 }
 0x296   : > { %1397 = vmax.xlane.f32.xlu1 %v1396_v31 }
 0x29a   : > { %1400 = vmax.xlane.f32.xlu1 %v1399_v27 }
 0x29e   : > { %1391 = vmax.xlane.f32.xlu1 %v1390_v23 }
 0x2a2   : > { %1394 = vmax.xlane.f32.xlu1 %v1393_v24 }
 0x2a6   : > { %1385 = vmax.xlane.f32.xlu1 %v1384_v15 }
 0x2aa   : > { %1388 = vmax.xlane.f32.xlu1 %v1387_v8 }
 0x2ae   : > { %1379 = vmax.xlane.f32.xlu1 %v1378_v14 }
 0x2b2   : > { %1382 = vmax.xlane.f32.xlu1 %v1381_v18 }
 0x2b6   : > { %1373 = vmax.xlane.f32.xlu1 %v1372_v32 }
 0x307   : > { %v1416_v34 = vpop.xlane.xlu1 %1415 }
 0x308   : > { %v1448_v63 = vsub.f32 %v1363_v53, %v1416_v34  ;;  %v1449_v3 = vsub.f32 %v1365_v11, %v1416_v34 }
 0x30a   : > { %v1508_v22 = vmul.f32 1.442695, %v1448_v63  ;;  %v1510_v39 = vmul.f32 1.442695, %v1449_v3 }
 0x30b   : > { %v1419_v1 = vpop.xlane.xlu1 %1418 }
 0x30c   : > { %2295 = vpow2.f32 %v1508_v22  ;;  %v1450_v41 = vsub.f32 %v1367_v52, %v1419_v1  ;;  %v1451_v7 = vsub.f32 %v1369_v0, %v1419_v1 }
 0x30d   : > { %2297 = vpow2.f32 %v1510_v39 }
 0x30e   : > { %v1512_v30 = vmul.f32 1.442695, %v1450_v41  ;;  %v1514_v35 = vmul.f32 1.442695, %v1451_v7 }
 0x30f   : > { %v1410_v12 = vpop.xlane.xlu1 %1409 }
 0x310   : > { %2299 = vpow2.f32 %v1512_v30  ;;  %v1444_v6 = vsub.f32 %v2973_v51, %v1410_v12  ;;  %v1445_v19 = vsub.f32 %v2975_v16, %v1410_v12 }
 0x311   : > { %2301 = vpow2.f32 %v1514_v35 }
 0x312   : > { %v1500_v55 = vmul.f32 1.442695, %v1444_v6  ;;  %v1502_v58 = vmul.f32 1.442695, %v1445_v19 }
 0x313   : > { %v1413_v53 = vpop.xlane.xlu1 %1412 }
 0x314   : > { %2303 = vpow2.f32 %v1500_v55  ;;  %v1446_v11 = vsub.f32 %v2977_v50, %v1413_v53  ;;  %v1447_v54 = vsub.f32 %v2979_v36, %v1413_v53 }
 0x315   : > { %2305 = vpow2.f32 %v1502_v58 }
 0x316   : > { %v1504_v52 = vmul.f32 1.442695, %v1446_v11  ;;  %v1506_v0 = vmul.f32 1.442695, %v1447_v54 }
 0x317   : > { %v1404_v56 = vpop.xlane.xlu1 %1403 }
 0x318   : > { %2307 = vpow2.f32 %v1504_v52  ;;  %v1440_v57 = vsub.f32 %v2965_v25, %v1404_v56  ;;  %v1441_v51 = vsub.f32 %v2967_v62, %v1404_v56 }
 0x319   : > { %v3047_v31 = vpop.eup %2295  ;;  %2309 = vpow2.f32 %v1506_v0 }
 0x31a   : > { %v3049_v16 = vpop.eup %2297  ;;  %v1492_v27 = vmul.f32 1.442695, %v1440_v57  ;;  %v1494_v29 = vmul.f32 1.442695, %v1441_v51 }
 0x31b   : > { %v1407_v23 = vpop.xlane.xlu1 %1406  ;;  %v1558_v50 = vadd.f32 %v3049_v16, %v3047_v31 }
 0x31c   : > { %2311 = vpow2.f32 %v1492_v27  ;;  %v1442_v36 = vsub.f32 %v2969_v48, %v1407_v23  ;;  %v1443_v24 = vsub.f32 %v2971_v20, %v1407_v23 }
 0x31d   : > { %v3055_v13 = vpop.eup %2299  ;;  %2313 = vpow2.f32 %v1494_v29  ;;  %1559 = vadd.xlane.f32.xlu1 %v1558_v50 }
 0x31e   : > { %v3057_v25 = vpop.eup %2301  ;;  %v1496_v62 = vmul.f32 1.442695, %v1442_v36  ;;  %v1498_v15 = vmul.f32 1.442695, %v1443_v24 }
 0x31f   : > { %v1398_v8 = vpop.xlane.xlu1 %1397  ;;  %v1561_v9 = vadd.f32 %v3057_v25, %v3055_v13 }
 0x320   : > { %2315 = vpow2.f32 %v1496_v62  ;;  %v1436_v14 = vsub.f32 %v2957_v46, %v1398_v8  ;;  %v1437_v18 = vsub.f32 %v2959_v60, %v1398_v8  ;;  %v1377_v62 = vpop.xlane.xlu0 %1376 }
 0x321   : > { %v3063_v48 = vpop.eup %2303  ;;  %2317 = vpow2.f32 %v1498_v15  ;;  %1562 = vadd.xlane.f32.xlu1 %v1561_v9 }
 0x322   : > { %v3065_v20 = vpop.eup %2305  ;;  %v1484_v28 = vmul.f32 1.442695, %v1436_v14  ;;  %v1486_v32 = vmul.f32 1.442695, %v1437_v18  ;;  %v1422_v18 = vsub.f32 %v2922_v42, %v1377_v62 }
 0x323   : > { %v1401_v33 = vpop.xlane.xlu1 %1400  ;;  %v1552_v34 = vadd.f32 %v3065_v20, %v3063_v48 }
 0x324   : > { %2319 = vpow2.f32 %v1484_v28  ;;  %v1438_v63 = vsub.f32 %v2961_v61, %v1401_v33  ;;  %v1439_v3 = vsub.f32 %v2963_v49, %v1401_v33  ;;  %v1423_v33 = vsub.f32 %v2924_v5, %v1377_v62  ;;  %v467_v62 = vld [vmem:[%s3387_s3 + $0x118] sm:$0xff] }
 0x325   : > { %v3071_v46 = vpop.eup %2307  ;;  %2321 = vpow2.f32 %v1486_v32  ;;  %1553 = vadd.xlane.f32.xlu1 %v1552_v34  ;;  %v1456_v42 = vmul.f32 1.442695, %v1422_v18  ;;  %v472_v18 = vld [vmem:[%s3387_s3 + $0x140] sm:$0xff] }
 0x326   : > { %v3073_v60 = vpop.eup %2309  ;;  %v1488_v22 = vmul.f32 1.442695, %v1438_v63  ;;  %v1490_v39 = vmul.f32 1.442695, %v1439_v3 }
 0x327   : > { %v1392_v1 = vpop.xlane.xlu1 %1391  ;;  %v1555_v41 = vadd.f32 %v3073_v60, %v3071_v46 }
 0x328   : > { %2323 = vpow2.f32 %v1488_v22  ;;  %v1432_v7 = vsub.f32 %v2944_v38, %v1392_v1  ;;  %v1433_v30 = vsub.f32 %v2949_v59, %v1392_v1 }
 0x329   : > { %v3079_v61 = vpop.eup %2311  ;;  %2325 = vpow2.f32 %v1490_v39  ;;  %1556 = vadd.xlane.f32.xlu1 %v1555_v41  ;;  %v1458_v41 = vmul.f32 1.442695, %v1423_v33  ;;  %v475_v33 = vld [vmem:[%s3387_s3 + $0x158] sm:$0xff] }
 0x32a   : > { %v3081_v49 = vpop.eup %2313  ;;  %v1476_v35 = vmul.f32 1.442695, %v1432_v7  ;;  %v1478_v12 = vmul.f32 1.442695, %v1433_v30 }
 0x32b   : > { %v1395_v6 = vpop.xlane.xlu1 %1394  ;;  %v1546_v19 = vadd.f32 %v3081_v49, %v3079_v61 }
 0x32c   : > { %2327 = vpow2.f32 %v1476_v35  ;;  %v1434_v55 = vsub.f32 %v2953_v47, %v1395_v6  ;;  %v1435_v58 = vsub.f32 %v2955_v40, %v1395_v6 }
 0x32d   : > { %v3087_v38 = vpop.eup %2315  ;;  %2329 = vpow2.f32 %v1478_v12  ;;  %1547 = vadd.xlane.f32.xlu1 %v1546_v19 }
 0x32e   : > { %v3089_v59 = vpop.eup %2317  ;;  %v1480_v53 = vmul.f32 1.442695, %v1434_v55  ;;  %v1482_v11 = vmul.f32 1.442695, %v1435_v58 }
 0x32f   : > { %v1386_v54 = vpop.xlane.xlu1 %1385  ;;  %v1549_v52 = vadd.f32 %v3089_v59, %v3087_v38 }
 0x330   : > { %2331 = vpow2.f32 %v1480_v53  ;;  %v1428_v0 = vsub.f32 %v2936_v10, %v1386_v54  ;;  %v1429_v56 = vsub.f32 %v2938_v21, %v1386_v54 }
 0x331   : > { %v3095_v47 = vpop.eup %2319  ;;  %2333 = vpow2.f32 %v1482_v11  ;;  %1550 = vadd.xlane.f32.xlu1 %v1549_v52 }
 0x332   : > { %v3097_v40 = vpop.eup %2321  ;;  %v1468_v57 = vmul.f32 1.442695, %v1428_v0  ;;  %v1470_v51 = vmul.f32 1.442695, %v1429_v56 }
 0x333   : > { %v1389_v27 = vpop.xlane.xlu1 %1388  ;;  %v1540_v29 = vadd.f32 %v3097_v40, %v3095_v47 }
 0x334   : > { %2335 = vpow2.f32 %v1468_v57  ;;  %v1430_v23 = vsub.f32 %v2940_v26, %v1389_v27  ;;  %v1431_v50 = vsub.f32 %v2942_v45, %v1389_v27 }
 0x335   : > { %v3103_v10 = vpop.eup %2323  ;;  %2337 = vpow2.f32 %v1470_v51  ;;  %1541 = vadd.xlane.f32.xlu1 %v1540_v29 }
 0x336   : > { %v3105_v21 = vpop.eup %2325  ;;  %v1472_v36 = vmul.f32 1.442695, %v1430_v23  ;;  %v1474_v24 = vmul.f32 1.442695, %v1431_v50  ;;  %v464_v50 = vld [vmem:[%s3387_s3 + $0x100] sm:$0xff] }
 0x337   : > { %v1380_v15 = vpop.xlane.xlu1 %1379  ;;  %v1543_v8 = vadd.f32 %v3105_v21, %v3103_v10 }
 0x338   : > { %2339 = vpow2.f32 %v1472_v36  ;;  %v1424_v9 = vsub.f32 %v2928_v37, %v1380_v15  ;;  %v1425_v26 = vsub.f32 %v2930_v43, %v1380_v15  ;;  %v466_v36 = vld [vmem:[%s3387_s3 + $0x110] sm:$0xff]  ;;  %v468_v15 = vld [vmem:[%s3387_s3 + $0x120] sm:$0xff] }
 0x339   : > { %v3111_v14 = vpop.eup %2327  ;;  %2341 = vpow2.f32 %v1474_v24  ;;  %1544 = vadd.xlane.f32.xlu1 %v1543_v8  ;;  %v465_v24 = vld [vmem:[%s3387_s3 + $0x108] sm:$0xff] }
 0x33a   : > { %v3113_v45 = vpop.eup %2329  ;;  %v1460_v28 = vmul.f32 1.442695, %v1424_v9  ;;  %v1462_v32 = vmul.f32 1.442695, %v1425_v26  ;;  %v469_v8 = vld [vmem:[%s3387_s3 + $0x128] sm:$0xff]  ;;  %v470_v9 = vld [vmem:[%s3387_s3 + $0x130] sm:$0xff] }
 0x33b   : > { %v1383_v34 = vpop.xlane.xlu1 %1382  ;;  %v1534_v63 = vadd.f32 %v3113_v45, %v3111_v14  ;;  %v471_v26 = vld [vmem:[%s3387_s3 + $0x138] sm:$0xff] }
 0x33c   : > { %2343 = vpow2.f32 %v1460_v28  ;;  %v1426_v37 = vsub.f32 %v2932_v17, %v1383_v34  ;;  %v1427_v43 = vsub.f32 %v2934_v44, %v1383_v34  ;;  %v473_v28 = vld [vmem:[%s3387_s3 + $0x148] sm:$0xff]  ;;  %v476_v34 = vld [vmem:[%s3387_s3 + $0x160] sm:$0xff] }
 0x33d   : > { %v3121_v3 = vpop.eup %2331  ;;  %2345 = vpow2.f32 %v1462_v32  ;;  %1535 = vadd.xlane.f32.xlu1 %v1534_v63  ;;  %v474_v32 = vld [vmem:[%s3387_s3 + $0x150] sm:$0xff]  ;;  %v477_v63 = vld [vmem:[%s3387_s3 + $0x168] sm:$0xff] }
 0x33e   : > { %v3123_v22 = vpop.eup %2333  ;;  %v1464_v39 = vmul.f32 1.442695, %v1426_v37  ;;  %v1466_v1 = vmul.f32 1.442695, %v1427_v43  ;;  %v478_v37 = vld [vmem:[%s3387_s3 + $0x170] sm:$0xff]  ;;  %v479_v43 = vld [vmem:[%s3387_s3 + $0x178] sm:$0xff] }
 0x33f   : > { %v1374_v5 = vpop.xlane.xlu1 %1373  ;;  %v1537_v7 = vadd.f32 %v3123_v22, %v3121_v3 }
 0x340   : > { %2347 = vpow2.f32 %v1464_v39  ;;  %v1420_v30 = vsub.f32 %v2918_v2, %v1374_v5  ;;  %v1421_v17 = vsub.f32 %v2920_v4, %v1374_v5  ;;  %v1758_v39 = vld [vmem:[%s3389_s5 + $0x8] sm:$0xff]  ;;  %v1761_v5 = vld [vmem:[%s3389_s5 + $0x20] sm:$0xff] }
 0x341   : > { %v3129_v44 = vpop.eup %2335  ;;  %2349 = vpow2.f32 %v1466_v1  ;;  %1538 = vadd.xlane.f32.xlu1 %v1537_v7  ;;  %v1759_v1 = vld [vmem:[%s3389_s5 + $0x10] sm:$0xff]  ;;  %v1762_v7 = vld [vmem:[%s3389_s5 + $0x28] sm:$0xff] }
 0x342   : > { %v3131_v35 = vpop.eup %2337  ;;  %2351 = vpow2.f32 %v1456_v42  ;;  %v1452_v12 = vmul.f32 1.442695, %v1420_v30  ;;  %v1454_v6 = vmul.f32 1.442695, %v1421_v17  ;;  %v1757_v42 = vld [vmem:[%s3389_s5] sm:$0xff]  ;;  %v1763_v30 = vld [vmem:[%s3389_s5 + $0x30] sm:$0xff] }
 0x343   : > { %2353 = vpow2.f32 %v1458_v41  ;;  %v1528_v19 = vadd.f32 %v3131_v35, %v3129_v44  ;;  %v1760_v41 = vld [vmem:[%s3389_s5 + $0x18] sm:$0xff] }
 0x344   : > { %2355 = vpow2.f32 %v1452_v12  ;;  %v1764_v17 = vld [vmem:[%s3389_s5 + $0x38] sm:$0xff] }
 0x345   : > { %v3135_v55 = vpop.eup %2339  ;;  %2357 = vpow2.f32 %v1454_v6  ;;  %1529 = vadd.xlane.f32.xlu1 %v1528_v19  ;;  %v3237_v6 = vpop.f32.mrf.mxu1 }
 0x346   : > { %v3137_v2 = vpop.eup %2341 }
 0x347   : > { %v1531_v4 = vadd.f32 %v3137_v2, %v3135_v55 }
 0x349   : > { %v3141_v58 = vpop.eup %2343  ;;  %1532 = vadd.xlane.f32.xlu0 %v1531_v4  ;;  %v3239_v4 = vpop.f32.mrf.mxu1 }
 0x34a   : > { %v3143_v53 = vpop.eup %2345 }
 0x34b   : > { %v1522_v11 = vadd.f32 %v3143_v53, %v3141_v58 }
 0x34d   : > { %v3147_v54 = vpop.eup %2347  ;;  %1523 = vadd.xlane.f32.xlu1 %v1522_v11 }
 0x34e   : > { %v3149_v52 = vpop.eup %2349 }
 0x34f   : > { %v3151_v0 = vpop.eup %2351  ;;  %v1525_v56 = vadd.f32 %v3149_v52, %v3147_v54 }
 0x350   : > { %v3155_v57 = vpop.eup %2353 }
 0x351   : > { %v3157_v51 = vpop.eup %2355  ;;  %1526 = vadd.xlane.f32.xlu0 %v1525_v56  ;;  %v1519_v23 = vadd.f32 %v3155_v57, %v3151_v0  ;;  %v3241_v56 = vpop.f32.mrf.mxu1 }
 0x352   : > { %v3159_v27 = vpop.eup %2357 }
 0x353   : > { %v1516_v29 = vadd.f32 %v3159_v27, %v3157_v51 }
 0x355   : > { %1517 = vadd.xlane.f32.xlu1 %v1516_v29  ;;  %1520 = vadd.xlane.f32.xlu0 %v1519_v23  ;;  %v3243_v23 = vpop.f32.mrf.mxu1 }
 0x366   : > { %804 = vperm.xlu1 %2266, %v464_v50  }
 0x36a   : > { %814 = vperm.xlu1 %2266, %v466_v36  }
 0x36b   : > { %809 = vperm.xlu0 %2265, %v465_v24  }
 0x36e   : > { %819 = vperm.xlu1 %2266, %v467_v62  }
 0x36f   : > { %824 = vperm.xlu0 %2265, %v468_v15  }
 0x372   : > { %829 = vperm.xlu1 %2266, %v469_v8  }
 0x373   : > { %834 = vperm.xlu0 %2265, %v470_v9  }
 0x376   : > { %839 = vperm.xlu1 %2266, %v471_v26   ;;  %v3249_v26 = vpop.f32.mrf.mxu1 }
 0x377   : > { %844 = vperm.xlu0 %2265, %v472_v18  }
 0x37a   : > { %849 = vperm.xlu1 %2266, %v473_v28  }
 0x37b   : > { %854 = vperm.xlu0 %2265, %v474_v32  }
 0x37e   : > { %859 = vperm.xlu1 %2266, %v475_v33   ;;  %v3251_v33 = vpop.f32.mrf.mxu1 }
 0x37f   : > { %864 = vperm.xlu0 %2265, %v476_v34  }
 0x382   : > { %869 = vperm.xlu1 %2266, %v477_v63  }
 0x383   : > { %874 = vperm.xlu0 %2265, %v478_v37  }
 0x386   : > { %879 = vperm.xlu1 %2266, %v479_v43   ;;  %v3257_v43 = vpop.f32.mrf.mxu1 }
 0x387   : > { %1767 = vperm.xlu0 %2265, %v1757_v42  }
 0x38a   : > { %1772 = vperm.xlu1 %2266, %v1758_v39  }
 0x38b   : > { %1777 = vperm.xlu0 %2265, %v1759_v1  }
 0x38e   : > { %1782 = vperm.xlu1 %2266, %v1760_v41  }
 0x38f   : > { %1787 = vperm.xlu0 %2265, %v1761_v5   ;;  %v3259_v5 = vpop.f32.mrf.mxu1 }
 0x392   : > { %1792 = vperm.xlu1 %2266, %v1762_v7  }
 0x393   : > { %1797 = vperm.xlu0 %2265, %v1763_v30  }
 0x396   : > { %1802 = vperm.xlu1 %2266, %v1764_v17   ;;  %v3265_v17 = vpop.f32.mrf.mxu1 }
 0x3a6   : > { %v1560_v12 = vpop.xlane.xlu1 %1559 }
 0x3a7   : > { %2359 = vrcp.f32 %v1560_v12 }
 0x3aa   : > { %v1563_v19 = vpop.xlane.xlu1 %1562 }
 0x3ab   : > { %2361 = vrcp.f32 %v1563_v19 }
 0x3ae   : > { %v1554_v11 = vpop.xlane.xlu1 %1553 }
 0x3af   : > { %2363 = vrcp.f32 %v1554_v11 }
 0x3b2   : > { %v1557_v29 = vpop.xlane.xlu1 %1556 }
 0x3b3   : > { %2365 = vrcp.f32 %v1557_v29 }
 0x3b4   : > { %v2360_v50 = vpop.eup %2359 }
 0x3b5   : > { %v1609_v62 = vmul.f32 %v2360_v50, %v3049_v16  ;;  %v1608_v8 = vmul.f32 %v2360_v50, %v3047_v31  ;;  %v3267_v50 = vpop.f32.mrf.mxu1 }
 0x3b6   : > { %v1548_v36 = vpop.xlane.xlu1 %1547 }
 0x3b7   : > { %2367 = vrcp.f32 %v1548_v36 }
 0x3b8   : > { %v2362_v24 = vpop.eup %2361 }
 0x3b9   : > { %v1611_v15 = vmul.f32 %v2362_v24, %v3057_v25  ;;  %v1610_v9 = vmul.f32 %v2362_v24, %v3055_v13 }
 0x3ba   : > { %v1551_v18 = vpop.xlane.xlu1 %1550 }
 0x3bb   : > { %2369 = vrcp.f32 %v1551_v18  ;;  %v1643_v28 = vpack.c.bf16 %v1611_v15, %v1609_v62  ;;  %v1642_v32 = vpack.c.bf16 %v1610_v9, %v1608_v8  ;;  %v3273_v62 = vpop.f32.mrf.mxu1 }
 0x3bc   : > { %v2364_v34 = vpop.eup %2363 }
 0x3bd   : > { %1644 = vmatprep.subr.bf16.mxu0 %v1643_v28  ;;  %v1605_v16 = vmul.f32 %v2364_v34, %v3065_v20  ;;  %v1604_v13 = vmul.f32 %v2364_v34, %v3063_v48  ;;  %v3275_v18 = vpop.f32.mrf.mxu1 }
 0x3be   : > { %1645 = vmatpush1.bf16.xpose.msra.mxu0 %v1642_v32  ;;  %v1542_v63 = vpop.xlane.xlu1 %1541 }
 0x3bf   : > { %2371 = vrcp.f32 %v1542_v63  ;;  %v3277_v34 = vpop.f32.mrf.mxu1 }
 0x3c0   : > { %v2366_v37 = vpop.eup %2365 }
 0x3c1   : > { %v1607_v31 = vmul.f32 %v2366_v37, %v3073_v60  ;;  %v1606_v25 = vmul.f32 %v2366_v37, %v3071_v46 }
 0x3c2   : > { %v1545_v42 = vpop.xlane.xlu1 %1544 }
 0x3c3   : > { %2373 = vrcp.f32 %v1545_v42  ;;  %v1641_v39 = vpack.c.bf16 %v1607_v31, %v1605_v16  ;;  %v1640_v1 = vpack.c.bf16 %v1606_v25, %v1604_v13  ;;  %v3283_v13 = vpop.f32.mrf.mxu1 }
 0x3c4   : > { %v2368_v41 = vpop.eup %2367 }
 0x3c5   : > { %1646 = vmatprep.subr.bf16.mxu0 %v1641_v39  ;;  %v1601_v20 = vmul.f32 %v2368_v41, %v3081_v49  ;;  %v1600_v46 = vmul.f32 %v2368_v41, %v3079_v61  ;;  %v3289_v41 = vpop.f32.mrf.mxu1 }
 0x3c6   : > { %1647 = vmatpush1.bf16.xpose.msra.mxu0 %v1640_v1  ;;  %v1536_v7 = vpop.xlane.xlu1 %1535 }
 0x3c7   : > { %2375 = vrcp.f32 %v1536_v7 }
 0x3c8   : > { %v2370_v30 = vpop.eup %2369 }
 0x3c9   : > { %v1603_v48 = vmul.f32 %v2370_v30, %v3089_v59  ;;  %v1602_v60 = vmul.f32 %v2370_v30, %v3087_v38 }
 0x3ca   : > { %v1539_v12 = vpop.xlane.xlu1 %1538 }
 0x3cb   : > { %2377 = vrcp.f32 %v1539_v12  ;;  %v1639_v19 = vpack.c.bf16 %v1603_v48, %v1601_v20  ;;  %v1638_v11 = vpack.c.bf16 %v1602_v60, %v1600_v46  ;;  %v1160_v48 = vpop.f32.mrf.mxu1 }
 0x3cc   : > { %v2372_v29 = vpop.eup %2371 }
 0x3cd   : > { %1648 = vmatprep.subr.bf16.mxu0 %v1639_v19  ;;  %v1597_v24 = vmul.f32 %v2372_v29, %v3097_v40  ;;  %v1596_v38 = vmul.f32 %v2372_v29, %v3095_v47 }
 0x3ce   : > { %1649 = vmatpush1.bf16.xpose.msra.mxu0 %v1638_v11  ;;  %v1530_v36 = vpop.xlane.xlu1 %1529  ;;  %v3295_v11 = vpop.f32.mrf.mxu1 }
 0x3cf   : > { %2379 = vrcp.f32 %v1530_v36 }
 0x3d0   : > { %v2374_v49 = vpop.eup %2373 }
 0x3d1   : > { %v1599_v61 = vmul.f32 %v2374_v49, %v3105_v21  ;;  %v1598_v59 = vmul.f32 %v2374_v49, %v3103_v10 }
 0x3d2   : > { %v1533_v15 = vpop.xlane.xlu0 %1532 }
 0x3d3   : > { %2381 = vrcp.f32 %v1533_v15  ;;  %v1637_v8 = vpack.c.bf16 %v1599_v61, %v1597_v24  ;;  %v1636_v9 = vpack.c.bf16 %v1598_v59, %v1596_v38 }
 0x3d4   : > { %v2376_v28 = vpop.eup %2375 }
 0x3d5   : > { %1650 = vmatprep.subr.bf16.mxu0 %v1637_v8  ;;  %v1593_v21 = vmul.f32 %v2376_v28, %v3113_v45  ;;  %v1592_v10 = vmul.f32 %v2376_v28, %v3111_v14 }
 0x3d6   : > { %1651 = vmatpush1.bf16.xpose.msra.mxu0 %v1636_v9  ;;  %v1524_v32 = vpop.xlane.xlu1 %1523 }
 0x3d7   : > { %2383 = vrcp.f32 %v1524_v32 }
 0x3d8   : > { %v2378_v40 = vpop.eup %2377 }
 0x3d9   : > { %v1595_v47 = vmul.f32 %v2378_v40, %v3123_v22  ;;  %v1594_v63 = vmul.f32 %v2378_v40, %v3121_v3 }
 0x3da   : > { %v1527_v37 = vpop.xlane.xlu0 %1526 }
 0x3db   : > { %2385 = vrcp.f32 %v1527_v37  ;;  %v1635_v16 = vpack.c.bf16 %v1595_v47, %v1593_v21  ;;  %v1634_v31 = vpack.c.bf16 %v1594_v63, %v1592_v10 }
 0x3dc   : > { %v2380_v25 = vpop.eup %2379 }
 0x3dd   : > { %1652 = vmatprep.subr.bf16.mxu0 %v1635_v16  ;;  %v1589_v22 = vmul.f32 %v2380_v25, %v3131_v35  ;;  %v1588_v3 = vmul.f32 %v2380_v25, %v3129_v44 }
 0x3de   : > { %1653 = vmatpush1.bf16.xpose.msra.mxu0 %v1634_v31  ;;  %v1518_v42 = vpop.xlane.xlu1 %1517  ;;  %v1521_v39 = vpop.xlane.xlu0 %1520 }
 0x3df   : > { %2387 = vrcp.f32 %v1518_v42 }
 0x3e0   : > { %v2382_v45 = vpop.eup %2381  ;;  %2389 = vrcp.f32 %v1521_v39 }
 0x3e1   : > { %v1591_v14 = vmul.f32 %v2382_v45, %v3137_v2  ;;  %v1590_v1 = vmul.f32 %v2382_v45, %v3135_v55 }
 0x3e2   : > { %v805_v20 = vpop.permute.xlu1 %804 }
 0x3e3   : > { %v1633_v7 = vpack.c.bf16 %v1591_v14, %v1589_v22  ;;  %v1632_v30 = vpack.c.bf16 %v1590_v1, %v1588_v3  ;;  %v1127_v12 = vadd.f32 %v3239_v4, %v805_v20  ;;  %v1125_v40 = vadd.f32 %v3237_v6, %v805_v20 }
 0x3e4   : > { %v2384_v60 = vpop.eup %2383 }
 0x3e5   : > { %1654 = vmatprep.subr.bf16.mxu0 %v1633_v7  ;;  %v1585_v29 = vmul.f32 %v2384_v60, %v3143_v53  ;;  %v1584_v36 = vmul.f32 %v2384_v60, %v3141_v58 }
 0x3e6   : > { %1655 = vmatpush1.bf16.xpose.msra.mxu0 %v1632_v30  ;;  %v810_v46 = vpop.permute.xlu0 %809 }
 0x3e7   : > { %v1131_v35 = vadd.f32 %v3243_v23, %v810_v46  ;;  %v1166_v23 = vpop.f32.mrf.mxu1  ;;  %v1129_v32 = vadd.f32 %v3241_v56, %v810_v46 }
 0x3e8   : > { %v2386_v19 = vpop.eup %2385 }
 0x3e9   : > { %v1613_v2 = vpack.c.bf16 %v1131_v35, %v1127_v12  ;;  %v1587_v44 = vmul.f32 %v2386_v19, %v3149_v52  ;;  %v1586_v55 = vmul.f32 %v2386_v19, %v3147_v54  ;;  %v815_v52 = vpop.permute.xlu1 %814  ;;  %v1168_v8 = vpop.f32.mrf.mxu1  ;;  %v1612_v47 = vpack.c.bf16 %v1129_v32, %v1125_v40 }
 0x3ea   : > { %v1137_v21 = vadd.f32 %v3251_v33, %v815_v52  ;;  %v825_v37 = vpop.permute.xlu0 %824  ;;  %v1135_v56 = vadd.f32 %v3249_v26, %v815_v52 }
 0x3eb   : > { %1676 = vmatprep.mubr.bf16.mxu0 %v1613_v2  ;;  %v1631_v24 = vpack.c.bf16 %v1587_v44, %v1585_v29  ;;  %v1630_v61 = vpack.c.bf16 %v1586_v55, %v1584_v36  ;;  %v1170_v9 = vpop.f32.mrf.mxu1 }
 0x3ec   : > { %v2388_v49 = vpop.eup %2387 }
 0x3ed   : > { %v2390_v38 = vpop.eup %2389  ;;  %v1581_v4 = vmul.f32 %v2388_v49, %v3159_v27  ;;  %1656 = vmatprep.subr.bf16.mxu0 %v1631_v24  ;;  %v1580_v15 = vmul.f32 %v2388_v49, %v3157_v51  ;;  %v820_v28 = vpop.permute.xlu1 %819 }
 0x3ee   : > { %v1583_v59 = vmul.f32 %v2390_v38, %v3155_v57  ;;  %1657 = vmatpush1.bf16.xpose.msra.mxu0 %v1630_v61  ;;  %v1582_v53 = vmul.f32 %v2390_v38, %v3151_v0  ;;  %v1141_v27 = vadd.f32 %v3259_v5, %v820_v28  ;;  %v1174_v57 = vpop.f32.mrf.mxu1  ;;  %v1139_v0 = vadd.f32 %v3257_v43, %v820_v28  ;;  %v835_v45 = vpop.permute.xlu0 %834 }
 0x3ef   : > { %v1147_v5 = vadd.f32 %v3267_v50, %v825_v37  ;;  %v1145_v43 = vadd.f32 %v3265_v17, %v825_v37  ;;  %v1155_v46 = vadd.f32 %v3277_v34, %v835_v45 }
 0x3f0   : > { %v1629_v54 = vpack.c.bf16 %v1583_v59, %v1581_v4  ;;  %v1628_v58 = vpack.c.bf16 %v1582_v53, %v1580_v15  ;;  %v1615_v10 = vpack.c.bf16 %v1141_v27, %v1137_v21  ;;  %v1176_v51 = vpop.f32.mrf.mxu1  ;;  %v1614_v6 = vpack.c.bf16 %v1139_v0, %v1135_v56 }
 0x3f1   : > { %v830_v63 = vpop.permute.xlu1 %829 }
 0x3f2   : > { %1658 = vmatprep.subr.bf16.mxu0 %v1629_v54  ;;  %v1151_v16 = vadd.f32 %v3275_v18, %v830_v63  ;;  %v1178_v31 = vpop.f32.mrf.mxu1  ;;  %v1149_v39 = vadd.f32 %v3273_v62, %v830_v63  ;;  %v1157_v18 = vadd.f32 %v3283_v13, %v835_v45  ;;  %v845_v30 = vpop.permute.xlu0 %844 }
 0x3f3   : > { %v1167_v60 = vadd.f32 %v1166_v23, %v845_v30  ;;  %v1165_v44 = vadd.f32 %v3295_v11, %v845_v30 }
 0x3f4   : > { %v1617_v25 = vpack.c.bf16 %v1151_v16, %v1147_v5  ;;  %v1180_v42 = vpop.f32.mrf.mxu1  ;;  %v1616_v3 = vpack.c.bf16 %v1149_v39, %v1145_v43 }
 0x3f5   : > { %v840_v33 = vpop.permute.xlu1 %839 }
 0x3f6   : > { %1659 = vmatpush1.bf16.xpose.msra.mxu0 %v1628_v58  ;;  %v1161_v22 = vadd.f32 %v1160_v48, %v840_v33  ;;  %v1184_v14 = vpop.f32.mrf.mxu1  ;;  %v1159_v50 = vadd.f32 %v3289_v41, %v840_v33  ;;  %v855_v19 = vpop.permute.xlu0 %854 }
 0x3f7   : > { %v1177_v29 = vadd.f32 %v1176_v51, %v855_v19  ;;  %v1175_v4 = vadd.f32 %v1174_v57, %v855_v19 }
 0x3f8   : > { %v1619_v26 = vpack.c.bf16 %v1161_v22, %v1157_v18  ;;  %v1186_v1 = vpop.f32.mrf.mxu1  ;;  %v1618_v48 = vpack.c.bf16 %v1159_v50, %v1155_v46 }
 0x3f9   : > { %v850_v7 = vpop.permute.xlu1 %849 }
 0x3fa   : > { %v1171_v20 = vadd.f32 %v1170_v9, %v850_v7  ;;  %v1188_v62 = vpop.f32.mrf.mxu1  ;;  %v1169_v13 = vadd.f32 %v1168_v8, %v850_v7  ;;  %v865_v61 = vpop.permute.xlu0 %864 }
 0x3fb   : > { %v1187_v59 = vadd.f32 %v1186_v1, %v865_v61  ;;  %v1185_v9 = vadd.f32 %v1184_v14, %v865_v61 }
 0x3fc   : > { %v1621_v12 = vpack.c.bf16 %v1171_v20, %v1167_v60  ;;  %v1190_v17 = vpop.f32.mrf.mxu1  ;;  %v1620_v41 = vpack.c.bf16 %v1169_v13, %v1165_v44 }
 0x3fd   : > { %1677 = vmatmul.mubr.bf16.vlgmr.msra.gmra.mxu0 %v1612_v47  ;;  %v860_v35 = vpop.permute.xlu1 %859  ;;  %v2291_v47 = vld [vmem:[%s3388_s4] sm:$0xff]  }
 0x3fe   : > { %1684 = vmatprep.mubr.bf16.mxu0 %v1615_v10  ;;  %v1181_v2 = vadd.f32 %v1180_v42, %v860_v35  ;;  %v1194_v55 = vpop.f32.mrf.mxu1  ;;  %v1179_v34 = vadd.f32 %v1178_v31, %v860_v35  ;;  %v875_v8 = vpop.permute.xlu0 %874  ;;  %2200 = vmatprep.mubr.bf16.mxu1 %v2291_v47 }
 0x3ff   : > { %v1195_v21 = vadd.f32 %v1194_v55, %v875_v8 }
 0x400   : > { %v1623_v36 = vpack.c.bf16 %v1181_v2, %v1177_v29  ;;  %v1196_v49 = vpop.f32.mrf.mxu1  ;;  %v1622_v52 = vpack.c.bf16 %v1179_v34, %v1175_v4 }
 0x401   : > { %v870_v24 = vpop.permute.xlu1 %869  ;;  %v1197_v28 = vadd.f32 %v1196_v49, %v875_v8  ;;  %v2293_v49 = vld [vmem:[%s3388_s4 + $0x10] sm:$0xff]  }
 0x402   : > { %v1191_v38 = vadd.f32 %v1190_v17, %v870_v24  ;;  %v1198_v23 = vpop.f32.mrf.mxu1  ;;  %v1189_v11 = vadd.f32 %v1188_v62, %v870_v24  ;;  %v2294_v24 = vld [vmem:[%s3388_s4 + $0x18] sm:$0xff]   ;;  %v1768_v34 = vpop.permute.xlu0 %1767 }
 0x404   : > { %v1625_v54 = vpack.c.bf16 %v1191_v38, %v1187_v59  ;;  %v1200_v15 = vpop.f32.mrf.mxu1  ;;  %v1624_v32 = vpack.c.bf16 %v1189_v11, %v1185_v9 }
 0x405   : > { %1685 = vmatmul.mubr.bf16.gmra.mxu0 %v1614_v6  ;;  %v880_v53 = vpop.permute.xlu1 %879 }
 0x406   : > { %1692 = vmatprep.mubr.bf16.mxu0 %v1617_v25  ;;  %v1201_v58 = vadd.f32 %v1200_v15, %v880_v53  ;;  %v1199_v40 = vadd.f32 %v1198_v23, %v880_v53  ;;  %v1778_v38 = vpop.permute.xlu0 %1777  ;;  %v2391_v15 = vld [vmem:[%s2566_s13 + $0x10] sm:$0xff] }
 0x408   : > { %v1627_v27 = vpack.c.bf16 %v1201_v58, %v1197_v28  ;;  %v1626_v57 = vpack.c.bf16 %v1199_v40, %v1195_v21  ;;  %v2392_v58 = vld [vmem:[%s2566_s13] sm:$0xff]  ;;  %v2393_v40 = vld [vmem:[%s2566_s13 + $0x18] sm:$0xff] }
 0x409   : > { %v1773_v61 = vpop.permute.xlu1 %1772 }
 0x40d   : > { %1693 = vmatmul.mubr.bf16.gmra.mxu0 %v1616_v3  ;;  %v1783_v4 = vpop.permute.xlu1 %1782 }
 0x40e   : > { %1700 = vmatprep.mubr.bf16.mxu0 %v1619_v26 }
 0x415   : > { %1701 = vmatmul.mubr.bf16.gmra.mxu0 %v1618_v48 }
 0x416   : > { %1708 = vmatprep.mubr.bf16.mxu0 %v1621_v12 }
 0x41d   : > { %1709 = vmatmul.mubr.bf16.gmra.mxu0 %v1620_v41 }
 0x41e   : > { %1716 = vmatprep.mubr.bf16.mxu0 %v1623_v36  ;;  %v2292_v36 = vld [vmem:[%s3388_s4 + $0x8] sm:$0xff]  }
 0x425   : > { %1717 = vmatmul.mubr.bf16.gmra.mxu0 %v1622_v52  ;;  %v1788_v52 = vpop.permute.xlu0 %1787 }
 0x426   : > { %1724 = vmatprep.mubr.bf16.mxu0 %v1625_v54 }
 0x429   : > { %v1798_v47 = vpop.permute.xlu0 %1797 }
 0x42d   : > { %1725 = vmatmul.mubr.bf16.gmra.mxu0 %v1624_v32  ;;  %v1793_v32 = vpop.permute.xlu1 %1792 }
 0x42e   : > { %1732 = vmatprep.mubr.bf16.mxu0 %v1627_v27 }
 0x435   : > { %1733 = vmatmul.mubr.bf16.gmra.mxu0 %v1626_v57 }
 0x4bd   : > { %v1678_v10 = vpop.f32.mrf.mxu0 }
 0x4bf   : > { %v1680_v51 = vpop.f32.mrf.mxu0 }
 0x4c0   : > { %v2394_v51 = vld [vmem:[%s2566_s13 + $0x8] sm:$0xff] }
 0x4c1   : > { %v1681_v63 = vpop.f32.mrf.mxu0 }
 0x4c2   : > { %v1749_v0 = vpack.c.bf16 %v1681_v63, %v1678_v10 }
 0x4c3   : > { %v1683_v37 = vpop.f32.mrf.mxu0 }
 0x4c5   : > { %v1686_v16 = vpop.f32.mrf.mxu0 }
 0x4c7   : > { %v1688_v56 = vpop.f32.mrf.mxu0 }
 0x4c9   : > { %v1689_v31 = vpop.f32.mrf.mxu0 }
 0x4ca   : > { %v1750_v5 = vpack.c.bf16 %v1689_v31, %v1686_v16  ;;  %v2395_v16 = vld [vmem:[%s2566_s13 + $0x30] sm:$0xff] }
 0x4cb   : > { %v1691_v6 = vpop.f32.mrf.mxu0 }
 0x4cd   : > { %v1694_v25 = vpop.f32.mrf.mxu0 }
 0x4cf   : > { %v1696_v42 = vpop.f32.mrf.mxu0 }
 0x4d1   : > { %v1697_v33 = vpop.f32.mrf.mxu0 }
 0x4d2   : > { %v1751_v41 = vpack.c.bf16 %v1697_v33, %v1694_v25  ;;  %v2396_v25 = vld [vmem:[%s2566_s13 + $0x20] sm:$0xff] }
 0x4d3   : > { %v1699_v39 = vpop.f32.mrf.mxu0 }
 0x4d5   : > { %v1702_v45 = vpop.f32.mrf.mxu0 }
 0x4d7   : > { %v1704_v22 = vpop.f32.mrf.mxu0 }
 0x4d9   : > { %v1705_v43 = vpop.f32.mrf.mxu0 }
 0x4da   : > { %v1752_v29 = vpack.c.bf16 %v1705_v43, %v1702_v45  ;;  %v2397_v45 = vld [vmem:[%s2566_s13 + $0x38] sm:$0xff] }
 0x4db   : > { %v1707_v14 = vpop.f32.mrf.mxu0 }
 0x4dc   : > { %v2398_v14 = vld [vmem:[%s2566_s13 + $0x28] sm:$0xff]  ;;  %s1918_s13 = sadd.s32 (%p2539_p6), %s2437_s23, %s2131_s9 }
 0x4dd   : > { %v1710_v18 = vpop.f32.mrf.mxu0  ;;  %s2132_s8 = sshll.u32 (%p2539_p6), %s1918_s13, 3 }
 0x4de   : > { %s1920_s19 = scalar_lea.vmem (%p2539_p6), %s3390_s6, %s2132_s8 }
 0x4df   : > { %v1712_v3 = vpop.f32.mrf.mxu0 }
 0x4e1   : > { %v1713_v26 = vpop.f32.mrf.mxu0 }
 0x4e2   : > { %v1753_v55 = vpack.c.bf16 %v1713_v26, %v1710_v18 }
 0x4e3   : > { %v1715_v1 = vpop.f32.mrf.mxu0 }
 0x4e5   : > { %v1718_v7 = vpop.f32.mrf.mxu0 }
 0x4e7   : > { %v1720_v50 = vpop.f32.mrf.mxu0 }
 0x4e9   : > { %v1721_v30 = vpop.f32.mrf.mxu0 }
 0x4ea   : > { %v1754_v44 = vpack.c.bf16 %v1721_v30, %v1718_v7 }
 0x4eb   : > { %v1723_v20 = vpop.f32.mrf.mxu0 }
 0x4ed   : > { %v1726_v46 = vpop.f32.mrf.mxu0 }
 0x4ef   : > { %v1728_v62 = vpop.f32.mrf.mxu0 }
 0x4f1   : > { %v1729_v60 = vpop.f32.mrf.mxu0 }
 0x4f2   : > { %v1755_v2 = vpack.c.bf16 %v1729_v60, %v1726_v46 }
 0x4f3   : > { %v1731_v48 = vpop.f32.mrf.mxu0 }
 0x4f5   : > { %v1734_v12 = vpop.f32.mrf.mxu0 }
 0x4f7   : > { %v1736_v17 = vpop.f32.mrf.mxu0 }
 0x4f9   : > { %v1737_v35 = vpop.f32.mrf.mxu0 }
 0x4fa   : > { %v1756_v13 = vpack.c.bf16 %v1737_v35, %v1734_v12 }
 0x4fb   : > { %v1739_v19 = vpop.f32.mrf.mxu0 }
 0x4fc   : > { %2184 = vmatprep.subr.bf16.mxu1 %v1756_v13 }
 0x4fd   : > { %2185 = vmatpush3.bf16.msra.mxu1 %v1756_v13 }
 0x4fe   : > { %2186 = vmatprep.subr.bf16.mxu1 %v1755_v2 }
 0x501   : > { %2187 = vmatpush3.bf16.msra.mxu1 %v1755_v2 }
 0x502   : > { %2188 = vmatprep.subr.bf16.mxu1 %v1754_v44 }
 0x505   : > { %2189 = vmatpush3.bf16.msra.mxu1 %v1754_v44 }
 0x506   : > { %2190 = vmatprep.subr.bf16.mxu1 %v1753_v55 }
 0x509   : > { %2191 = vmatpush3.bf16.msra.mxu1 %v1753_v55 }
 0x50a   : > { %2192 = vmatprep.subr.bf16.mxu1 %v1752_v29 }
 0x50d   : > { %2193 = vmatpush3.bf16.msra.mxu1 %v1752_v29 }
 0x50e   : > { %2194 = vmatprep.subr.bf16.mxu1 %v1751_v41 }
 0x511   : > { %2195 = vmatpush3.bf16.msra.mxu1 %v1751_v41 }
 0x512   : > { %2196 = vmatprep.subr.bf16.mxu1 %v1750_v5 }
 0x515   : > { %2197 = vmatpush3.bf16.msra.mxu1 %v1750_v5  ;;  %v1803_v5 = vpop.permute.xlu1 %1802 }
 0x516   : > { %2198 = vmatprep.subr.bf16.mxu1 %v1749_v0 }
 0x519   : > { %2199 = vmatpush3.bf16.msra.mxu1 %v1749_v0 }
 0x51c   : > { %2201 = vmatmul.mubr.bf16.vlgmr.msra.gmra.mxu1 %v2292_v36 }
 0x51d   : > { %2204 = vmatprep.mubr.bf16.mxu1 %v2293_v49 }
 0x524   : > { %2205 = vmatmul.mubr.bf16.gmra.mxu1 %v2294_v24 }
 0x5dc   : > { %v2202_v23 = vpop.f32.mrf.mxu1 }
 0x5dd   : > { %v1872_v59 = vadd.f32 %v2202_v23, %v1778_v38 }
 0x5de   : > { %v1863_v54 = vpop.f32.mrf.mxu1 }
 0x5df   : > { %v1896_v53 = vadd.f32 %v2391_v15, %v1872_v59  ;;  %v1864_v11 = vadd.f32 %v1863_v54, %v1768_v34 }
 0x5e0   : > { %v2203_v8 = vpop.f32.mrf.mxu1 }
 0x5e1   : > { %1904 = vst [vmem:[%s3331_s16 + $0x10] sm:$0xff] %v1896_v53  ;;  %v1894_v9 = vadd.f32 %v2392_v58, %v1864_v11  ;;  %v1875_v28 = vadd.f32 %v2203_v8, %v1783_v4 }
 0x5e2   : > { %v1866_v27 = vpop.f32.mrf.mxu1 }
 0x5e3   : > { %1902 = vst [vmem:[%s3331_s16] sm:$0xff] %v1894_v9  ;;  %v1897_v21 = vadd.f32 %v2393_v40, %v1875_v28  ;;  %v1867_v57 = vadd.f32 %v1866_v27, %v1773_v61 }
 0x5e4   : > { %v2206_v10 = vpop.f32.mrf.mxu1 }
 0x5e5   : > { %1905 = vst [vmem:[%s3331_s16 + $0x18] sm:$0xff] %v1897_v21  ;;  %v1895_v63 = vadd.f32 %v2394_v51, %v1867_v57  ;;  %v1888_v0 = vadd.f32 %v2206_v10, %v1798_v47 }
 0x5e6   : > { %v1879_v37 = vpop.f32.mrf.mxu1 }
 0x5e7   : > { %1903 = vst [vmem:[%s3331_s16 + $0x8] sm:$0xff] %v1895_v63  ;;  %v1900_v56 = vadd.f32 %v2395_v16, %v1888_v0  ;;  %v1880_v31 = vadd.f32 %v1879_v37, %v1788_v52 }
 0x5e8   : > { %v2207_v6 = vpop.f32.mrf.mxu1  ;;  %v1967_v1 = vld [vmem:[%s3331_s16 + $0x10] sm:$0xff] (%p2539_p6) }
 0x5e9   : > { %1908 = vst [vmem:[%s3331_s16 + $0x30] sm:$0xff] %v1900_v56  ;;  %v1898_v42 = vadd.f32 %v2396_v25, %v1880_v31  ;;  %v1891_v33 = vadd.f32 %v2207_v6, %v1803_v5  ;;  %1968 = vst [vmem:[%s1920_s19 + $0x20] sm:$0xff] (%p2539_p6), %v1967_v1 }
 0x5ea   : > { %v1882_v39 = vpop.f32.mrf.mxu1  ;;  %v1963_v3 = vld [vmem:[%s3331_s16] sm:$0xff] (%p2539_p6) }
 0x5eb   : > { %1906 = vst [vmem:[%s3331_s16 + $0x20] sm:$0xff] %v1898_v42  ;;  %v1901_v22 = vadd.f32 %v2397_v45, %v1891_v33  ;;  %v1883_v43 = vadd.f32 %v1882_v39, %v1793_v32  ;;  %1916 = sbr.rel (!%p2539_p6) target bundleno = 1528 (0x5f8), region = 86  ;;  %1964 = vst [vmem:[%s1920_s19] sm:$0xff] (%p2539_p6), %v1963_v3 }
 0x5ec   : > { %v1969_v7 = vld [vmem:[%s3331_s16 + $0x18] sm:$0xff] (%p2539_p6) }
 0x5ed   : > { %1909 = vst [vmem:[%s3331_s16 + $0x38] sm:$0xff] %v1901_v22  ;;  %v1899_v18 = vadd.f32 %v2398_v14, %v1883_v43  ;;  %1970 = vst [vmem:[%s1920_s19 + $0x30] sm:$0xff] (%p2539_p6), %v1969_v7 }
 0x5ee   : > { %v1965_v26 = vld [vmem:[%s3331_s16 + $0x8] sm:$0xff] (%p2539_p6) }
 0x5ef   : > { %1907 = vst [vmem:[%s3331_s16 + $0x28] sm:$0xff] %v1899_v18  ;;  %1966 = vst [vmem:[%s1920_s19 + $0x10] sm:$0xff] (%p2539_p6), %v1965_v26 }
 0x5f0   : > { %v1975_v20 = vld [vmem:[%s3331_s16 + $0x30] sm:$0xff] }
 0x5f1   : > { %1976 = vst [vmem:[%s1920_s19 + $0x60] sm:$0xff] %v1975_v20 }
 0x5f2   : > { %v1971_v50 = vld [vmem:[%s3331_s16 + $0x20] sm:$0xff] }
 0x5f3   : > { %1972 = vst [vmem:[%s1920_s19 + $0x40] sm:$0xff] %v1971_v50 }
 0x5f4   : > { %v1977_v46 = vld [vmem:[%s3331_s16 + $0x38] sm:$0xff] }
 0x5f5   : > { %1978 = vst [vmem:[%s1920_s19 + $0x70] sm:$0xff] %v1977_v46 }
 0x5f6   : > { %v1973_v30 = vld [vmem:[%s3331_s16 + $0x28] sm:$0xff] }
 0x5f7   : > { %1974 = vst [vmem:[%s1920_s19 + $0x50] sm:$0xff] %v1973_v30 }
 0x5f8 PF: > { %s16_s27 = sadd.s32 1, %s2453_s27   ;;  %s3392_s21 = smov %s2433_s22 }
 0x5f9   : > { %p13_p13 = scmp.ge.s32.totalorder %s16_s27, 6   ;;  %s3393_s22 = smov %s2547_s12 }
 0x5fa   : > { %s3394_s23 = smov %s2445_s25  ;;  %s3395_s24 = smov %s2449_s26 }
 0x5fb   : > { %s3396_s25 = smov %s3399_s28  ;;  %s3397_s26 = smov %s3403_s29 }
 0x5fc   :  { %15 = sbr.rel (!%p13_p13) target bundleno = 4 (0x4), region = 158 }

</bundles_post_ra>
